<compile_context>
chip_gen: v6e
topology: v6e:2x2x1
jax: 0.10.0
libtpu: 0.0.40
codegen_flags: <defaults>
</compile_context>

<pallas_src>
import numpy as np
import jax
import jax.numpy as jnp
from jax.experimental import pallas as pl
from jax.experimental.pallas import tpu as pltpu

# --- small, module-consistent synthetic sizes ---------------------------------
B, C, H, W = 2, 32, 16, 16          # C plays the role of num_features (512 real net)
HW = H * W                          # 256 -> lane-dense (2x128 lanes)
NUM_CLASSES = 12                    # args.num_classes
BASE_CLASS = 8                      # args.base_class
TEMPERATURE = 16.0                  # args.temperature
KSIZE = 3                           # conv_mask kernel size
NTAP = KSIZE * KSIZE
EPS_MASK = 1e-5                     # eps in mask_normalize
EPS_NORM = 1e-12                    # F.normalize eps
BN_EPS = 1e-5

# Feature-map transport dtype (HBM traffic + MXU operand dtype).  Set to
# jnp.float32 for bit-for-bit parity with PyTorch f32 (at 2x the MXU cost).
FEAT_DTYPE = jnp.bfloat16


def _choose_nb(batch):
    """Batch block per grid step.

    Output-block rule: NB == batch or NB a multiple of 8 dividing batch.
    v7x (2 TensorCores): keep >= 2 grid steps so the "parallel" batch axis can
    shard across cores.  v5e/v6e (single TC, 128 MiB VMEM): a larger serial
    block is fine — the per-step overhead (~0.35 us) is amortized either way.
    """
    if batch <= 8 or batch % 16 != 0:
        return batch
    return (batch // 2 // 8) * 8


NB = _choose_nb(B)
assert B % NB == 0 and (NB == B or NB % 8 == 0)
assert HW % 128 == 0 and C % 8 == 0


# ------------------------------------------------------------------------------
# Fused kernel: conv_mask + BN(eval) + sigmoid + (mask-normalized) masked pool +
# cosine classifier.  One grid step handles one batch block of NB elements.
# ------------------------------------------------------------------------------
def _mynet_fused_kernel(x_ref, wct_ref, smat_ref, wcls_ref, bnshift_ref,
                        mask_ref, logits_ref):
    x = x_ref[...]                               # (NB, C, HW)  bf16
    wct = wct_ref[...]                           # (NTAP, C)    bf16 (BN scale folded)
    wcls = wcls_ref[...]                         # (C, NUM_CLASSES) f32, pre-normalized
    bn_shift = bnshift_ref[0]                    # f32 scalar (SMEM)

    nb = x.shape[0]

    # (1) 3x3-conv channel reduction: all 9 taps, whole batch block, one batched
    #     bf16 MXU matmul with f32 accumulate.
    wct_b = jnp.broadcast_to(wct[None], (nb,) + wct.shape)          # (NB, NTAP, C)
    tmaps = jnp.einsum("btc,bch->bth", wct_b, x,
                       preferred_element_type=jnp.float32)          # (NB, NTAP, HW)

    # (2) Tap combine on the MXU.  Shift + zero-padding validity are folded into
    #     precomputed 0/1 matrices: conv[b, p'] = sum_t sum_p tmaps[b,t,p]*S[t,p,p'].
    conv = jnp.dot(tmaps[:, 0], smat_ref[0], preferred_element_type=jnp.float32)
    for t in range(1, NTAP):
        conv = conv + jnp.dot(tmaps[:, t], smat_ref[t],
                              preferred_element_type=jnp.float32)   # (NB, HW)

    # (3) BatchNorm2d(1) eval-mode (scale folded into wct) + sigmoid; lane-dense
    #     full-block store of the mask output.
    sig = jax.nn.sigmoid(conv + bn_shift)                           # (NB, HW) f32
    mask_ref[...] = sig

    # (4) Masked pooling direction.  mask_normalize's per-sample denominator and
    #     adaptive_avg_pool2d's 1/HW are positive scalars that cancel exactly
    #     under F.normalize, so only sum_p x[:, p] * (sig[p] + eps) is needed.
    #     This is a tiny per-sample matvec, done as VPU multiply + lane reduce
    #     (single bf16->f32 upcast of x; MXU stays reserved for the real matmuls).
    w_pool = sig + EPS_MASK                                         # (NB, HW) f32
    pooled = jnp.sum(x.astype(jnp.float32) * w_pool[:, None, :], axis=-1)  # (NB, C)

    # (5) L2 normalize (EUP rsqrt, no divide) + cosine classifier: one block matmul.
    ss = jnp.sum(pooled * pooled, axis=-1, keepdims=True)           # (NB, 1)
    fn = pooled * jax.lax.rsqrt(jnp.maximum(ss, EPS_NORM * EPS_NORM))
    logits_ref[...] = TEMPERATURE * jnp.dot(fn, wcls,
                                            preferred_element_type=jnp.float32)


def _mynet_pallas_call(x_flat, wct, smat, wcls, bn_shift):
    grid = (B // NB,)
    mask_flat, logits = pl.pallas_call(
        _mynet_fused_kernel,
        grid=grid,
        in_specs=[
            pl.BlockSpec((NB, C, HW), lambda b: (b, 0, 0)),          # feature block
            pl.BlockSpec((NTAP, C), lambda b: (0, 0)),               # conv taps (bf16)
            pl.BlockSpec((NTAP, HW, HW), lambda b: (0, 0, 0)),       # shift+valid mats
            pl.BlockSpec((C, NUM_CLASSES), lambda b: (0, 0)),        # classifier
            pl.BlockSpec(memory_space=pltpu.MemorySpace.SMEM),       # BN shift scalar
        ],
        out_specs=[
            pl.BlockSpec((NB, HW), lambda b: (b, 0)),                # mask (lane-dense)
            pl.BlockSpec((NB, NUM_CLASSES), lambda b: (b, 0)),       # logits
        ],
        out_shape=[
            jax.ShapeDtypeStruct((B, HW), jnp.float32),
            jax.ShapeDtypeStruct((B, NUM_CLASSES), jnp.float32),
        ],
        compiler_params=pltpu.CompilerParams(
            # Batch blocks are independent -> shardable across v7x's 2 TCs.
            dimension_semantics=("parallel",),
            # ~2.3 MiB resident constants + double-buffered blocks; 32 MiB is a
            # safe explicit cap on every generation (v7x physical VMEM = 64 MiB).
            vmem_limit_bytes=32 * 1024 * 1024),
    )(x_flat, wct, smat, wcls, bn_shift)
    return mask_flat, logits


# ------------------------------------------------------------------------------
# Parameter prep (once): fold BN scale into conv taps, pre-normalize and
# pre-concatenate the classifier weights, build the per-tap shift+validity mats.
# ------------------------------------------------------------------------------
def prepare_params(params):
    bn = params["bn"]
    scale = bn["gamma"] / jnp.sqrt(bn["var"] + BN_EPS)
    shift = bn["beta"] - bn["mean"] * scale

    # Conv taps (NTAP, C), row t = kh*KSIZE + kw, BN scale folded, bf16 for the MXU.
    wct = (params["conv_mask_w"].reshape(NTAP, C) * scale).astype(jnp.bfloat16)
    bn_shift = jnp.reshape(shift, (1,)).astype(jnp.float32)

    def l2norm_rows(wmat):
        nrm = jnp.sqrt(jnp.sum(wmat * wmat, axis=-1, keepdims=True))
        return wmat / jnp.maximum(nrm, EPS_NORM)

    # cos classifier: T * norm(x) @ norm(concat([fc.W[:base], dummy.W]))^T
    w_all = jnp.concatenate([params["fc_w"][:BASE_CLASS], params["dummy_w"]], axis=0)
    wcls = l2norm_rows(w_all).T.astype(jnp.float32)                  # (C, NUM_CLASSES)

    # S[t, p_in, p_out] = 1 iff p_in = (i+dh)*W + (j+dw) is the in-bounds source
    # pixel of output pixel p_out = i*W + j for tap (dh, dw); zero rows encode the
    # zero padding of the 3x3 conv.
    smat = np.zeros((NTAP, HW, HW), np.float32)
    t = 0
    for kh in range(KSIZE):
        for kw in range(KSIZE):
            dh, dw = kh - 1, kw - 1
            for i in range(H):
                for j in range(W):
                    ii, jj = i + dh, j + dw
                    if 0 <= ii < H and 0 <= jj < W:
                        smat[t, ii * W + jj, i * W + j] = 1.0
            t += 1
    smat = jnp.asarray(smat)

    return dict(wct=wct, smat=smat, wcls=wcls, bn_shift=bn_shift)


# ------------------------------------------------------------------------------
# MYNET.forward (mode='cos', debug3_maskLoss=True, mask_normalize=True)
# ------------------------------------------------------------------------------
@jax.jit
def mynet_forward(x_nchw, prep):
    # TODO(synk): resnet18 encoder not reproducible from the module source;
    # x_nchw is treated as the encoder output feature map (B, num_features, H, W).
    x_flat = x_nchw.reshape(B, C, HW).astype(FEAT_DTYPE)   # straight reshape, no transpose
    mask_flat, logits = _mynet_pallas_call(
        x_flat, prep["wct"], prep["smat"], prep["wcls"], prep["bn_shift"])
    mask_sigmoid = mask_flat.reshape(B, 1, H, W)           # PyTorch (B, 1, H, W)
    return logits, mask_sigmoid


# ------------------------------------------------------------------------------
# Pure-JAX f32 reference (literal PyTorch composition) for tolerance checking.
# ------------------------------------------------------------------------------
@jax.jit
def mynet_forward_reference(x_nchw, params):
    w_oihw = jnp.transpose(params["conv_mask_w"], (2, 0, 1))[None]   # (1, C, K, K)
    conv = jax.lax.conv_general_dilated(
        x_nchw, w_oihw, window_strides=(1, 1), padding="SAME",
        dimension_numbers=("NCHW", "OIHW", "NCHW"))                  # (B, 1, H, W)
    bn = params["bn"]
    scale = bn["gamma"] / jnp.sqrt(bn["var"] + BN_EPS)
    conv = conv * scale + (bn["beta"] - bn["mean"] * scale)
    mask_sigmoid = jax.nn.sigmoid(conv)

    denom = (mask_sigmoid + EPS_MASK).sum(-1).sum(-1)[..., None, None]
    xm = x_nchw * ((mask_sigmoid + EPS_MASK) / denom)
    pooled = jnp.mean(xm, axis=(2, 3))                               # (B, C)

    def l2n(v):
        n = jnp.sqrt(jnp.sum(v * v, axis=-1, keepdims=True))
        return v / jnp.maximum(n, EPS_NORM)

    x1 = l2n(pooled) @ l2n(params["fc_w"]).T
    x2 = l2n(pooled) @ l2n(params["dummy_w"]).T
    logits = TEMPERATURE * jnp.concatenate([x1[:, :BASE_CLASS], x2], axis=1)
    return logits, mask_sigmoid


def init_params(key):
    k_fc, k_conv = jax.random.split(key, 2)

    # fc: orthogonal rows (nn.init.orthogonal_), shape (NUM_CLASSES, C)
    a = jax.random.normal(k_fc, (C, NUM_CLASSES), jnp.float32)
    q, _ = jnp.linalg.qr(a)
    fc_w = q.T                                        # (NUM_CLASSES, C)

    # Module: dummy_orthogonal_classifier.weight = fc.weight[base_class:]
    dummy_w = fc_w[BASE_CLASS:]                       # (NUM_CLASSES - BASE_CLASS, C)

    # conv_mask weight: torch (1, C, 3, 3), stored here as (3, 3, C)
    conv_mask_w = 0.1 * jax.random.normal(k_conv, (KSIZE, KSIZE, C), jnp.float32)

    # BatchNorm2d(1) eval-mode stats / affine params (non-trivial to exercise fold)
    bn = dict(gamma=jnp.float32(1.25), beta=jnp.float32(-0.05),
              mean=jnp.float32(0.03), var=jnp.float32(0.8))

    return dict(fc_w=fc_w, dummy_w=dummy_w, conv_mask_w=conv_mask_w, bn=bn)


if __name__ == "__main__":
    key = jax.random.PRNGKey(0)
    k_x, k_p = jax.random.split(key)
    params = init_params(k_p)
    prep = prepare_params(params)

    # encoder feature map stand-in (NCHW, like the tensor feeding conv_mask)
    x = jax.random.normal(k_x, (B, C, H, W), jnp.float32)

    logits, mask_sigmoid = mynet_forward(x, prep)
    jax.block_until_ready((logits, mask_sigmoid))

    assert logits.shape == (B, NUM_CLASSES)
    assert mask_sigmoid.shape == (B, 1, H, W)
    assert bool(jnp.all(jnp.isfinite(logits)))
    assert bool(jnp.all((mask_sigmoid >= 0.0) & (mask_sigmoid <= 1.0)))

    # Tolerance check vs. the f32 reference (kernel uses bf16 feature/conv-weight
    # transport, so exact parity is not expected).
    ref_logits, ref_mask = mynet_forward_reference(x, params)
    jax.block_until_ready((ref_logits, ref_mask))
    mask_err = float(jnp.max(jnp.abs(mask_sigmoid - ref_mask)))
    logit_err = float(jnp.max(jnp.abs(logits - ref_logits)))
    assert mask_err < 5e-2, f"mask mismatch vs reference: {mask_err}"
    assert logit_err < 5e-1, f"logits mismatch vs reference: {logit_err}"

    print("KERNEL_OK")
</pallas_src>

<mosaic_0001>
module attributes {stable_mosaic.version = 11 : i64} {
  func.func @_mynet_fused_kernel(%arg0: i32, %arg1: memref<2x32x256xbf16, #tpu.memory_space<vmem>>, %arg2: memref<9x32xbf16, #tpu.memory_space<vmem>>, %arg3: memref<9x256x256xf32, #tpu.memory_space<vmem>>, %arg4: memref<32x12xf32, #tpu.memory_space<vmem>>, %arg5: memref<1xf32, #tpu.memory_space<smem>>, %arg6: memref<2x256xf32, #tpu.memory_space<vmem>>, %arg7: memref<2x12xf32, #tpu.memory_space<vmem>>) attributes {dimension_semantics = [#tpu.dimension_semantics<parallel>], iteration_bounds = array<i64: 1>, scalar_prefetch = 0 : i64, scratch_operands = 0 : i64, tpu.core_type = #tpu.core_type<tc>, window_params = [{transform_indices = @transform_0, window_bounds = array<i64: 2, 32, 256>}, {pipeline_mode = #tpu.pipeline_mode<synchronous>, transform_indices = @transform_1, window_bounds = array<i64: 9, 32>}, {pipeline_mode = #tpu.pipeline_mode<synchronous>, transform_indices = @transform_2, window_bounds = array<i64: 9, 256, 256>}, {pipeline_mode = #tpu.pipeline_mode<synchronous>, transform_indices = @transform_3, window_bounds = array<i64: 32, 12>}, {transform_indices = @transform_4, window_bounds = array<i64: 1>}, {transform_indices = @transform_5, window_bounds = array<i64: 2, 256>}, {transform_indices = @transform_6, window_bounds = array<i64: 2, 12>}]} {
    %c0 = arith.constant 0 : index
    %c0_0 = arith.constant 0 : index
    %c0_1 = arith.constant 0 : index
    %0 = vector.load %arg1[%c0, %c0_0, %c0_1] : memref<2x32x256xbf16, #tpu.memory_space<vmem>>, vector<2x32x256xbf16>
    %c0_2 = arith.constant 0 : index
    %c0_3 = arith.constant 0 : index
    %1 = vector.load %arg2[%c0_2, %c0_3] : memref<9x32xbf16, #tpu.memory_space<vmem>>, vector<9x32xbf16>
    %c0_4 = arith.constant 0 : index
    %c0_5 = arith.constant 0 : index
    %2 = vector.load %arg4[%c0_4, %c0_5] : memref<32x12xf32, #tpu.memory_space<vmem>>, vector<32x12xf32>
    %c0_6 = arith.constant 0 : index
    %3 = memref.load %arg5[%c0_6] : memref<1xf32, #tpu.memory_space<smem>>
    %4 = vector.shape_cast %1 : vector<9x32xbf16> to vector<1x9x32xbf16>
    %5 = vector.shape_cast %4 : vector<1x9x32xbf16> to vector<1x9x32xbf16>
    %6 = vector.broadcast %5 : vector<1x9x32xbf16> to vector<2x9x32xbf16>
    "tpu.trace_start"() <{level = 10 : i32, message = "btc,bch->bth"}> : () -> ()
    %cst = arith.constant dense<0.000000e+00> : vector<2x9x256xf32>
    %7 = tpu.matmul %6, %0, %cst {dimension_numbers = #tpu.dot_dimension_numbers<[2], [1], [1], [2], [0, 0, 0, 1, 1, 2], [0], [0]>} : vector<2x9x32xbf16>, vector<2x32x256xbf16>, vector<2x9x256xf32> -> vector<2x9x256xf32>
    "tpu.trace_stop"() : () -> ()
    %8 = vector.extract_strided_slice %7 {offsets = [0, 0, 0], sizes = [2, 1, 256], strides = [1, 1, 1]} : vector<2x9x256xf32> to vector<2x1x256xf32>
    %9 = vector.shape_cast %8 : vector<2x1x256xf32> to vector<2x256xf32>
    %c0_7 = arith.constant 0 : index
    %c0_8 = arith.constant 0 : index
    %c0_9 = arith.constant 0 : index
    %10 = vector.load %arg3[%c0_7, %c0_8, %c0_9] : memref<9x256x256xf32, #tpu.memory_space<vmem>>, vector<1x256x256xf32>
    %11 = vector.shape_cast %10 : vector<1x256x256xf32> to vector<256x256xf32>
    %cst_10 = arith.constant dense<0.000000e+00> : vector<2x256xf32>
    %12 = tpu.matmul %9, %11, %cst_10 {dimension_numbers = #tpu.dot_dimension_numbers<[1], [0], [0], [1], [0, 0, 1, 1], [], []>} : vector<2x256xf32>, vector<256x256xf32>, vector<2x256xf32> -> vector<2x256xf32>
    %13 = vector.extract_strided_slice %7 {offsets = [0, 1, 0], sizes = [2, 1, 256], strides = [1, 1, 1]} : vector<2x9x256xf32> to vector<2x1x256xf32>
    %14 = vector.shape_cast %13 : vector<2x1x256xf32> to vector<2x256xf32>
    %c1 = arith.constant 1 : index
    %c0_11 = arith.constant 0 : index
    %c0_12 = arith.constant 0 : index
    %15 = vector.load %arg3[%c1, %c0_11, %c0_12] : memref<9x256x256xf32, #tpu.memory_space<vmem>>, vector<1x256x256xf32>
    %16 = vector.shape_cast %15 : vector<1x256x256xf32> to vector<256x256xf32>
    %cst_13 = arith.constant dense<0.000000e+00> : vector<2x256xf32>
    %17 = tpu.matmul %14, %16, %cst_13 {dimension_numbers = #tpu.dot_dimension_numbers<[1], [0], [0], [1], [0, 0, 1, 1], [], []>} : vector<2x256xf32>, vector<256x256xf32>, vector<2x256xf32> -> vector<2x256xf32>
    %18 = arith.addf %12, %17 : vector<2x256xf32>
    %19 = vector.extract_strided_slice %7 {offsets = [0, 2, 0], sizes = [2, 1, 256], strides = [1, 1, 1]} : vector<2x9x256xf32> to vector<2x1x256xf32>
    %20 = vector.shape_cast %19 : vector<2x1x256xf32> to vector<2x256xf32>
    %c2 = arith.constant 2 : index
    %c0_14 = arith.constant 0 : index
    %c0_15 = arith.constant 0 : index
    %21 = vector.load %arg3[%c2, %c0_14, %c0_15] : memref<9x256x256xf32, #tpu.memory_space<vmem>>, vector<1x256x256xf32>
    %22 = vector.shape_cast %21 : vector<1x256x256xf32> to vector<256x256xf32>
    %cst_16 = arith.constant dense<0.000000e+00> : vector<2x256xf32>
    %23 = tpu.matmul %20, %22, %cst_16 {dimension_numbers = #tpu.dot_dimension_numbers<[1], [0], [0], [1], [0, 0, 1, 1], [], []>} : vector<2x256xf32>, vector<256x256xf32>, vector<2x256xf32> -> vector<2x256xf32>
    %24 = arith.addf %18, %23 : vector<2x256xf32>
    %25 = vector.extract_strided_slice %7 {offsets = [0, 3, 0], sizes = [2, 1, 256], strides = [1, 1, 1]} : vector<2x9x256xf32> to vector<2x1x256xf32>
    %26 = vector.shape_cast %25 : vector<2x1x256xf32> to vector<2x256xf32>
    %c3 = arith.constant 3 : index
    %c0_17 = arith.constant 0 : index
    %c0_18 = arith.constant 0 : index
    %27 = vector.load %arg3[%c3, %c0_17, %c0_18] : memref<9x256x256xf32, #tpu.memory_space<vmem>>, vector<1x256x256xf32>
    %28 = vector.shape_cast %27 : vector<1x256x256xf32> to vector<256x256xf32>
    %cst_19 = arith.constant dense<0.000000e+00> : vector<2x256xf32>
    %29 = tpu.matmul %26, %28, %cst_19 {dimension_numbers = #tpu.dot_dimension_numbers<[1], [0], [0], [1], [0, 0, 1, 1], [], []>} : vector<2x256xf32>, vector<256x256xf32>, vector<2x256xf32> -> vector<2x256xf32>
    %30 = arith.addf %24, %29 : vector<2x256xf32>
    %31 = vector.extract_strided_slice %7 {offsets = [0, 4, 0], sizes = [2, 1, 256], strides = [1, 1, 1]} : vector<2x9x256xf32> to vector<2x1x256xf32>
    %32 = vector.shape_cast %31 : vector<2x1x256xf32> to vector<2x256xf32>
    %c4 = arith.constant 4 : index
    %c0_20 = arith.constant 0 : index
    %c0_21 = arith.constant 0 : index
    %33 = vector.load %arg3[%c4, %c0_20, %c0_21] : memref<9x256x256xf32, #tpu.memory_space<vmem>>, vector<1x256x256xf32>
    %34 = vector.shape_cast %33 : vector<1x256x256xf32> to vector<256x256xf32>
    %cst_22 = arith.constant dense<0.000000e+00> : vector<2x256xf32>
    %35 = tpu.matmul %32, %34, %cst_22 {dimension_numbers = #tpu.dot_dimension_numbers<[1], [0], [0], [1], [0, 0, 1, 1], [], []>} : vector<2x256xf32>, vector<256x256xf32>, vector<2x256xf32> -> vector<2x256xf32>
    %36 = arith.addf %30, %35 : vector<2x256xf32>
    %37 = vector.extract_strided_slice %7 {offsets = [0, 5, 0], sizes = [2, 1, 256], strides = [1, 1, 1]} : vector<2x9x256xf32> to vector<2x1x256xf32>
    %38 = vector.shape_cast %37 : vector<2x1x256xf32> to vector<2x256xf32>
    %c5 = arith.constant 5 : index
    %c0_23 = arith.constant 0 : index
    %c0_24 = arith.constant 0 : index
    %39 = vector.load %arg3[%c5, %c0_23, %c0_24] : memref<9x256x256xf32, #tpu.memory_space<vmem>>, vector<1x256x256xf32>
    %40 = vector.shape_cast %39 : vector<1x256x256xf32> to vector<256x256xf32>
    %cst_25 = arith.constant dense<0.000000e+00> : vector<2x256xf32>
    %41 = tpu.matmul %38, %40, %cst_25 {dimension_numbers = #tpu.dot_dimension_numbers<[1], [0], [0], [1], [0, 0, 1, 1], [], []>} : vector<2x256xf32>, vector<256x256xf32>, vector<2x256xf32> -> vector<2x256xf32>
    %42 = arith.addf %36, %41 : vector<2x256xf32>
    %43 = vector.extract_strided_slice %7 {offsets = [0, 6, 0], sizes = [2, 1, 256], strides = [1, 1, 1]} : vector<2x9x256xf32> to vector<2x1x256xf32>
    %44 = vector.shape_cast %43 : vector<2x1x256xf32> to vector<2x256xf32>
    %c6 = arith.constant 6 : index
    %c0_26 = arith.constant 0 : index
    %c0_27 = arith.constant 0 : index
    %45 = vector.load %arg3[%c6, %c0_26, %c0_27] : memref<9x256x256xf32, #tpu.memory_space<vmem>>, vector<1x256x256xf32>
    %46 = vector.shape_cast %45 : vector<1x256x256xf32> to vector<256x256xf32>
    %cst_28 = arith.constant dense<0.000000e+00> : vector<2x256xf32>
    %47 = tpu.matmul %44, %46, %cst_28 {dimension_numbers = #tpu.dot_dimension_numbers<[1], [0], [0], [1], [0, 0, 1, 1], [], []>} : vector<2x256xf32>, vector<256x256xf32>, vector<2x256xf32> -> vector<2x256xf32>
    %48 = arith.addf %42, %47 : vector<2x256xf32>
    %49 = vector.extract_strided_slice %7 {offsets = [0, 7, 0], sizes = [2, 1, 256], strides = [1, 1, 1]} : vector<2x9x256xf32> to vector<2x1x256xf32>
    %50 = vector.shape_cast %49 : vector<2x1x256xf32> to vector<2x256xf32>
    %c7 = arith.constant 7 : index
    %c0_29 = arith.constant 0 : index
    %c0_30 = arith.constant 0 : index
    %51 = vector.load %arg3[%c7, %c0_29, %c0_30] : memref<9x256x256xf32, #tpu.memory_space<vmem>>, vector<1x256x256xf32>
    %52 = vector.shape_cast %51 : vector<1x256x256xf32> to vector<256x256xf32>
    %cst_31 = arith.constant dense<0.000000e+00> : vector<2x256xf32>
    %53 = tpu.matmul %50, %52, %cst_31 {dimension_numbers = #tpu.dot_dimension_numbers<[1], [0], [0], [1], [0, 0, 1, 1], [], []>} : vector<2x256xf32>, vector<256x256xf32>, vector<2x256xf32> -> vector<2x256xf32>
    %54 = arith.addf %48, %53 : vector<2x256xf32>
    %55 = vector.extract_strided_slice %7 {offsets = [0, 8, 0], sizes = [2, 1, 256], strides = [1, 1, 1]} : vector<2x9x256xf32> to vector<2x1x256xf32>
    %56 = vector.shape_cast %55 : vector<2x1x256xf32> to vector<2x256xf32>
    %c8 = arith.constant 8 : index
    %c0_32 = arith.constant 0 : index
    %c0_33 = arith.constant 0 : index
    %57 = vector.load %arg3[%c8, %c0_32, %c0_33] : memref<9x256x256xf32, #tpu.memory_space<vmem>>, vector<1x256x256xf32>
    %58 = vector.shape_cast %57 : vector<1x256x256xf32> to vector<256x256xf32>
    %cst_34 = arith.constant dense<0.000000e+00> : vector<2x256xf32>
    %59 = tpu.matmul %56, %58, %cst_34 {dimension_numbers = #tpu.dot_dimension_numbers<[1], [0], [0], [1], [0, 0, 1, 1], [], []>} : vector<2x256xf32>, vector<256x256xf32>, vector<2x256xf32> -> vector<2x256xf32>
    %60 = arith.addf %54, %59 : vector<2x256xf32>
    %61 = vector.broadcast %3 : f32 to vector<2x256xf32>
    %62 = arith.addf %60, %61 : vector<2x256xf32>
    %63 = arith.negf %62 : vector<2x256xf32>
    %64 = math.exp %63 : vector<2x256xf32>
    %cst_35 = arith.constant 1.000000e+00 : f32
    %65 = vector.broadcast %cst_35 : f32 to vector<2x256xf32>
    %66 = arith.addf %65, %64 : vector<2x256xf32>
    %67 = arith.divf %65, %66 : vector<2x256xf32>
    %c0_36 = arith.constant 0 : index
    %c0_37 = arith.constant 0 : index
    %68 = vector.load %arg6[%c0_36, %c0_37] : memref<2x256xf32, #tpu.memory_space<vmem>>, vector<2x256xf32>
    tpu.vector_store %arg6[%c0_36, %c0_37], %67 {strides = array<i32>} : memref<2x256xf32, #tpu.memory_space<vmem>>, vector<2x256xf32>,
    %cst_38 = arith.constant 9.99999974E-6 : f32
    %69 = vector.broadcast %cst_38 : f32 to vector<2x256xf32>
    %70 = arith.addf %67, %69 : vector<2x256xf32>
    %71 = arith.extf %0 : vector<2x32x256xbf16> to vector<2x32x256xf32>
    %72 = vector.shape_cast %70 : vector<2x256xf32> to vector<2x1x256xf32>
    %73 = vector.broadcast %72 : vector<2x1x256xf32> to vector<2x32x256xf32>
    %74 = arith.mulf %71, %73 : vector<2x32x256xf32>
    %cst_39 = arith.constant dense<0.000000e+00> : vector<2x32xf32>
    %75 = vector.multi_reduction <add>, %74, %cst_39 [2] : vector<2x32x256xf32> to vector<2x32xf32>
    %76 = arith.mulf %75, %75 : vector<2x32xf32>
    %cst_40 = arith.constant dense<0.000000e+00> : vector<2xf32>
    %77 = vector.multi_reduction <add>, %76, %cst_40 [1] : vector<2x32xf32> to vector<2xf32>
    %78 = vector.shape_cast %77 : vector<2xf32> to vector<2x1xf32>
    %cst_41 = arith.constant 1.000000e-24 : f32
    %79 = vector.broadcast %cst_41 : f32 to vector<2x1xf32>
    %80 = arith.maximumf %78, %79 : vector<2x1xf32>
    %81 = math.rsqrt %80 : vector<2x1xf32>
    %82 = vector.broadcast %81 : vector<2x1xf32> to vector<2x32xf32>
    %83 = arith.mulf %75, %82 : vector<2x32xf32>
    %cst_42 = arith.constant dense<0.000000e+00> : vector<2x12xf32>
    %84 = tpu.matmul %83, %2, %cst_42 {dimension_numbers = #tpu.dot_dimension_numbers<[1], [0], [0], [1], [0, 0, 1, 1], [], []>} : vector<2x32xf32>, vector<32x12xf32>, vector<2x12xf32> -> vector<2x12xf32>
    %cst_43 = arith.constant 1.600000e+01 : f32
    %85 = vector.broadcast %cst_43 : f32 to vector<2x12xf32>
    %86 = arith.mulf %85, %84 : vector<2x12xf32>
    %c0_44 = arith.constant 0 : index
    %c0_45 = arith.constant 0 : index
    %87 = vector.load %arg7[%c0_44, %c0_45] : memref<2x12xf32, #tpu.memory_space<vmem>>, vector<2x12xf32>
    tpu.vector_store %arg7[%c0_44, %c0_45], %86 {strides = array<i32>} : memref<2x12xf32, #tpu.memory_space<vmem>>, vector<2x12xf32>,
    return
  }
  func.func @transform_0(%arg0: i32) -> (i32, i32, i32) {
    %c0_i32 = arith.constant 0 : i32
    %c0_i32_0 = arith.constant 0 : i32
    %c0_i32_1 = arith.constant 0 : i32
    return %arg0, %c0_i32, %c0_i32_0 : i32, i32, i32
  }
  func.func @transform_1(%arg0: i32) -> (i32, i32) {
    %c0_i32 = arith.constant 0 : i32
    %c0_i32_0 = arith.constant 0 : i32
    %c0_i32_1 = arith.constant 0 : i32
    return %c0_i32, %c0_i32_0 : i32, i32
  }
  func.func @transform_2(%arg0: i32) -> (i32, i32, i32) {
    %c0_i32 = arith.constant 0 : i32
    %c0_i32_0 = arith.constant 0 : i32
    %c0_i32_1 = arith.constant 0 : i32
    %c0_i32_2 = arith.constant 0 : i32
    return %c0_i32, %c0_i32_0, %c0_i32_1 : i32, i32, i32
  }
  func.func @transform_3(%arg0: i32) -> (i32, i32) {
    %c0_i32 = arith.constant 0 : i32
    %c0_i32_0 = arith.constant 0 : i32
    %c0_i32_1 = arith.constant 0 : i32
    return %c0_i32, %c0_i32_0 : i32, i32
  }
  func.func @transform_4(%arg0: i32) -> i32 {
    %c0_i32 = arith.constant 0 : i32
    %c0_i32_0 = arith.constant 0 : i32
    return %c0_i32 : i32
  }
  func.func @transform_5(%arg0: i32) -> (i32, i32) {
    %c0_i32 = arith.constant 0 : i32
    %c0_i32_0 = arith.constant 0 : i32
    return %arg0, %c0_i32 : i32, i32
  }
  func.func @transform_6(%arg0: i32) -> (i32, i32) {
    %c0_i32 = arith.constant 0 : i32
    %c0_i32_0 = arith.constant 0 : i32
    return %arg0, %c0_i32 : i32, i32
  }
}

</mosaic_0001>

<bundles_post_ra>
// kernel: mynet_forward.1
= control target key start
LH: loop header
LB: loop body
LE: loop exit
PB: predicated region body
PF: predicated region fallthrough
CT: control target
= control target key end

     0   :  { %13 = vsyncpa [#allocation4], 0  ;;  %s2297_s0 = inlined_call_operand.vmem [shape: bf16[2,32,256], index: 0, kind: input, shape index: {}]   ;;  %s2298_s1 = inlined_call_operand.hbm [shape: bf16[9,32], index: 1, kind: input, shape index: {}]   ;;  %s2299_s2 = inlined_call_operand.hbm [shape: f32[9,256,256], index: 2, kind: input, shape index: {}]   ;;  %s2300_s3 = inlined_call_operand.vmem [shape: f32[32,12], index: 3, kind: input, shape index: {}]   ;;  %s2301_s4 = inlined_call_operand.<no memory space> [shape: f32[1], index: 4, kind: input, shape index: {}]   ;;  %s2302_s5 = inlined_call_operand.vmem [shape: f32[2,256], index: 5, kind: output, shape index: {0}]   ;;  %s2303_s6 = inlined_call_operand.hbm [shape: f32[2,12], index: 6, kind: output, shape index: {1}]  }
   0x1   :  { %14 = vsyncpa [#allocation7], 0 }
   0x2   :  { %15 = vsyncpa [#allocation5], 0  ;;  %s2037_s21 = smov [#allocation3]  }
   0x3   :  { %s23_s22 = sshll.u32 %s2037_s21, 4  ;;  %s24_s22 = int_to_ptr.vmem [resolvable:$true] %s23_s22 }
   0x4   :  { %s1979_s23 = scalar_lea.vmem %s24_s22, 128  ;;  %p1984_p1 = scmp.lt.s32.totalorder %s24_s22, %s24_s22 }
   0x5   :  { %p1980_p0 = scmp.ne.s32.totalorder %s24_s22, %s1979_s23  ;;  %p1985_p2 = scmp.lt.s32.totalorder %s1979_s23, %s1979_s23 }
   0x7   :  { %p1986_p3 = por %p1985_p2, %p1984_p1 }
   0x9   :  { %p1987_p4 = pnand %p1986_p3, %p1980_p0 }
   0xb   :  { %1990 = shalt.err (!%p1987_p4)
}
   0xc   :  { %s2038_s24 = smov 64   ;;  %s2039_s25 = smov 4  }
   0xd   :  { %29 = dma.hbm_to_vmem [thread:$0]  %s2298_s1, 128, %s24_s22, [#allocation4], %s2038_s24, %s2038_s24, %s2039_s25  }
   0xe   :  { %s2040_s28 = smov [#allocation6]  }
   0xf   :  { %s35_s29 = sshll.u32 %s2040_s28, 4  ;;  %s36_s29 = int_to_ptr.vmem [resolvable:$true] %s35_s29 }
  0x10   :  { %s1999_s30 = scalar_lea.vmem %s36_s29, 73728  ;;  %p2004_p6 = scmp.lt.s32.totalorder %s36_s29, %s36_s29 }
  0x11   :  { %p2000_p5 = scmp.ne.s32.totalorder %s36_s29, %s1999_s30  ;;  %p2005_p7 = scmp.lt.s32.totalorder %s1999_s30, %s1999_s30 }
  0x13   :  { %p2006_p8 = por %p2005_p7, %p2004_p6 }
  0x15   :  { %p2007_p9 = pnand %p2006_p8, %p2000_p5 }
  0x17   :  { %2010 = shalt.err (!%p2007_p9)
}
  0x18   :  { %s2041_s7 = smov 256   ;;  %s2042_s8 = smov 16  }
  0x19   :  { %41 = dma.hbm_to_vmem [thread:$0]  %s2299_s2, 73728, %s36_s29, [#allocation7], %s2041_s7, %s2041_s7, %s2042_s8  }
  0x1a   :  { %2031 = dma.done.wait [#allocation4], 128  }
  0x1b   :  { %2032 = vsyncadd [#allocation4], 4294967168 }
  0x1c   :  { %2033 = dma.done.wait [#allocation7], 73728  }
  0x1d   :  { %2034 = vsyncadd [#allocation7], 4294893568  ;;  %v2043_v0 = vmov 0   ;;  %v55_v1 = vld [vmem:[%s2297_s0 + $0x10] sm:$0xff]  ;;  %v56_v2 = vld [vmem:[%s2297_s0 + $0x18] sm:$0xff]  ;;  %vm93_vm0 = vcmask 261120  }
  0x1e   :  { %129 = vmatprep.mubr.bf16.mxu1 %v2043_v0  ;;  %1943 = vset.pattern.permute.xlu0 %v2043_v0  ;;  %v53_v3 = vld [vmem:[%s2297_s0] sm:$0xff]  ;;  %v1904_v4 = vcombine.high %v55_v1, %v56_v2  ;;  %v1903_v5 = vcombine.low %v55_v1, %v56_v2  ;;  %v54_v6 = vld [vmem:[%s2297_s0 + $0x8] sm:$0xff]  ;;  %v59_v8 = vld [vmem:[%s2297_s0 + $0x30] sm:$0xff]  ;;  %vm337_vm1 = vcmask 1041409   ;;  %vm1672_vm2 = vcmask 130112  }
  0x1f   :  { %1942 = vset.pattern.permute.xlu1 %v2043_v0  ;;  %v1902_v7 = vcombine.high %v53_v3, %v54_v6  ;;  %v60_v9 = vld [vmem:[%s2297_s0 + $0x38] sm:$0xff]  ;;  %v299_v10 = vld [vmem:[#allocation6 + $0x2f8] sm:$0xff]  ;;  %v1901_v11 = vcombine.low %v53_v3, %v54_v6  ;;  %v297_v13 = vld [vmem:[#allocation6 + $0x2e8] sm:$0xff]  ;;  %vm1679_vm3 = vcmask 195712   ;;  %vm1686_vm4 = vcmask 261312  }
  0x20   :  { %109 = vmatprep.subr.bf16.mxu1 %v1904_v4  ;;  %343 = vmatprep.subr.mxu0 %v299_v10  ;;  %v298_v12 = vld [vmem:[#allocation6 + $0x2f0] sm:$0xff]  ;;  %v1909_v14 = vcombine.high %v59_v8, %v60_v9  ;;  %v296_v15 = vld [vmem:[#allocation6 + $0x2e0] sm:$0xff]  ;;  %v295_v16 = vld [vmem:[#allocation6 + $0x2d8] sm:$0xff]  ;;  %v1908_v22 = vcombine.low %v59_v8, %v60_v9  ;;  %vm1709_vm5 = vcmask 254976   ;;  %vm2046_vm6 = vmmov 0  }
  0x21   :  { %110 = vmatpush1.bf16.msra.mxu1 %v1903_v5  ;;  %344 = vmatpush1.msra.mxu0 %v298_v12  ;;  %v57_v17 = vld [vmem:[%s2297_s0 + $0x20] sm:$0xff]  ;;  %v58_v18 = vld [vmem:[%s2297_s0 + $0x28] sm:$0xff]  ;;  %v294_v19 = vld [vmem:[#allocation6 + $0x2d0] sm:$0xff]  ;;  %vm1878_vm7 = vcmask 91136  }
  0x22   :  { %111 = vmatprep.subr.bf16.mxu1 %v1902_v7  ;;  %345 = vmatprep.subr.mxu0 %v297_v13  ;;  %v1948_v20 = vld [vmem:[#allocation3] sm:$0x1f]   ;;  %v293_v21 = vld [vmem:[#allocation6 + $0x2c8] sm:$0xff]  ;;  %v292_v23 = vld [vmem:[#allocation6 + $0x2c0] sm:$0xff]  ;;  %v1907_v24 = vcombine.high %v57_v17, %v58_v18  ;;  %v1906_v27 = vcombine.low %v57_v17, %v58_v18 }
  0x23   :  { %346 = vmatpush1.msra.mxu0 %v296_v15  ;;  %v291_v25 = vld [vmem:[#allocation6 + $0x2b8] sm:$0xff]  ;;  %v290_v26 = vld [vmem:[#allocation6 + $0x2b0] sm:$0xff]  ;;  %v289_v28 = vld [vmem:[#allocation6 + $0x2a8] sm:$0xff] }
  0x24   :  { %347 = vmatprep.subr.mxu0 %v295_v16  ;;  %v288_v29 = vld [vmem:[#allocation6 + $0x2a0] sm:$0xff]  ;;  %v234_v30 = vld [vmem:[#allocation6 + $0xf8] sm:$0xff]  ;;  %v286_v32 = vld [vmem:[#allocation6 + $0x290] sm:$0xff] }
  0x25   :  { %112 = vmatpush1.bf16.msra.mxu1 %v1901_v11  ;;  %348 = vmatpush1.msra.mxu0 %v294_v19  ;;  %v287_v31 = vld [vmem:[#allocation6 + $0x298] sm:$0xff]  ;;  %v285_v33 = vld [vmem:[#allocation6 + $0x288] sm:$0xff]  ;;  %v233_v34 = vld [vmem:[#allocation6 + $0xf0] sm:$0xff] }
  0x26   :  { %172 = vmatprep.subr.bf16.mxu1 %v1909_v14  ;;  %349 = vmatprep.subr.mxu0 %v293_v21  ;;  %v284_v35 = vld [vmem:[#allocation6 + $0x280] sm:$0xff]  ;;  %v232_v36 = vld [vmem:[#allocation6 + $0xe8] sm:$0xff]  ;;  %v283_v37 = vld [vmem:[#allocation6 + $0x278] sm:$0xff] }
  0x27   :  { %350 = vmatpush1.msra.mxu0 %v292_v23  ;;  %v231_v38 = vld [vmem:[#allocation6 + $0xe0] sm:$0xff]  ;;  %v282_v39 = vld [vmem:[#allocation6 + $0x270] sm:$0xff]  ;;  %v230_v40 = vld [vmem:[#allocation6 + $0xd8] sm:$0xff] }
  0x28   :  { %1905 = vmatmul.mubr.msk.bf16.vlgmr.msra.gmra.mxu1 %vm93_vm0, %v1948_v20  ;;  %351 = vmatprep.subr.mxu0 %v291_v25  ;;  %v281_v41 = vld [vmem:[#allocation6 + $0x268] sm:$0xff]  ;;  %v229_v42 = vld [vmem:[#allocation6 + $0xd0] sm:$0xff]  ;;  %v280_v43 = vld [vmem:[#allocation6 + $0x260] sm:$0xff] }
  0x29   :  { %173 = vmatpush1.bf16.msra.mxu1 %v1908_v22  ;;  %192 = vmatprep.mubr.bf16.mxu1 %v2043_v0  ;;  %v228_v44 = vld [vmem:[#allocation6 + $0xc8] sm:$0xff]  ;;  %v279_v45 = vld [vmem:[#allocation6 + $0x258] sm:$0xff]  ;;  %v227_v46 = vld [vmem:[#allocation6 + $0xc0] sm:$0xff] }
  0x2a   :  { %174 = vmatprep.subr.bf16.mxu1 %v1907_v24  ;;  %352 = vmatpush1.msra.mxu0 %v290_v26  ;;  %v278_v47 = vld [vmem:[#allocation6 + $0x250] sm:$0xff]  ;;  %v226_v48 = vld [vmem:[#allocation6 + $0xb8] sm:$0xff]  ;;  %v277_v49 = vld [vmem:[#allocation6 + $0x248] sm:$0xff] }
  0x2b   :  { %353 = vmatprep.subr.mxu0 %v289_v28  ;;  %v225_v50 = vld [vmem:[#allocation6 + $0xb0] sm:$0xff]  ;;  %v276_v51 = vld [vmem:[#allocation6 + $0x240] sm:$0xff]  ;;  %v224_v52 = vld [vmem:[#allocation6 + $0xa8] sm:$0xff] }
  0x2c   :  { %354 = vmatpush1.msra.mxu0 %v288_v29  ;;  %v275_v53 = vld [vmem:[#allocation6 + $0x238] sm:$0xff]  ;;  %v223_v54 = vld [vmem:[#allocation6 + $0xa0] sm:$0xff]  ;;  %v274_v55 = vld [vmem:[#allocation6 + $0x230] sm:$0xff] }
  0x2d   :  { %175 = vmatpush1.bf16.msra.mxu1 %v1906_v27  ;;  %355 = vmatprep.subr.mxu0 %v287_v31  ;;  %v222_v56 = vld [vmem:[#allocation6 + $0x98] sm:$0xff]  ;;  %v273_v57 = vld [vmem:[#allocation6 + $0x228] sm:$0xff]  ;;  %v221_v58 = vld [vmem:[#allocation6 + $0x90] sm:$0xff] }
  0x2e   :  { %420 = vmatprep.subr.mxu1 %v234_v30  ;;  %356 = vmatpush1.msra.mxu0 %v286_v32  ;;  %v272_v59 = vld [vmem:[#allocation6 + $0x220] sm:$0xff]  ;;  %v220_v60 = vld [vmem:[#allocation6 + $0x88] sm:$0xff]  ;;  %v271_v61 = vld [vmem:[#allocation6 + $0x218] sm:$0xff] }
  0x2f   :  { %357 = vmatprep.subr.mxu0 %v285_v33  ;;  %v219_v62 = vld [vmem:[#allocation6 + $0x80] sm:$0xff]  ;;  %v270_v63 = vld [vmem:[#allocation6 + $0x210] sm:$0xff]  ;;  %v218_v0 = vld [vmem:[#allocation6 + $0x78] sm:$0xff] }
  0x30   :  { %1910 = vmatmul.mubr.msk.bf16.vlgmr.msra.gmra.mxu1 %vm93_vm0, %v1948_v20  ;;  %358 = vmatpush1.msra.mxu0 %v284_v35  ;;  %v269_v1 = vld [vmem:[#allocation6 + $0x208] sm:$0xff]  ;;  %v217_v2 = vld [vmem:[#allocation6 + $0x70] sm:$0xff]  ;;  %v268_v3 = vld [vmem:[#allocation6 + $0x200] sm:$0xff] }
  0x31   :  { %421 = vmatpush1.msra.mxu1 %v233_v34  ;;  %359 = vmatprep.subr.mxu0 %v283_v37  ;;  %v216_v4 = vld [vmem:[#allocation6 + $0x68] sm:$0xff]  ;;  %v331_v5 = vld [vmem:[#allocation6 + $0x3f8] sm:$0xff]  ;;  %v215_v6 = vld [vmem:[#allocation6 + $0x60] sm:$0xff] }
  0x32   :  { %422 = vmatprep.subr.mxu1 %v232_v36  ;;  %360 = vmatpush1.msra.mxu0 %v282_v39  ;;  %v330_v7 = vld [vmem:[#allocation6 + $0x3f0] sm:$0xff]  ;;  %v214_v8 = vld [vmem:[#allocation6 + $0x58] sm:$0xff]  ;;  %v329_v9 = vld [vmem:[#allocation6 + $0x3e8] sm:$0xff] }
  0x33   :  { %423 = vmatpush1.msra.mxu1 %v231_v38  ;;  %361 = vmatprep.subr.mxu0 %v281_v41  ;;  %v213_v10 = vld [vmem:[#allocation6 + $0x50] sm:$0xff]  ;;  %v328_v11 = vld [vmem:[#allocation6 + $0x3e0] sm:$0xff]  ;;  %v212_v12 = vld [vmem:[#allocation6 + $0x48] sm:$0xff] }
  0x34   :  { %424 = vmatprep.subr.mxu1 %v230_v40  ;;  %362 = vmatpush1.msra.mxu0 %v280_v43  ;;  %v327_v13 = vld [vmem:[#allocation6 + $0x3d8] sm:$0xff]  ;;  %v211_v14 = vld [vmem:[#allocation6 + $0x40] sm:$0xff]  ;;  %v326_v15 = vld [vmem:[#allocation6 + $0x3d0] sm:$0xff] }
  0x35   :  { %425 = vmatpush1.msra.mxu1 %v229_v42  ;;  %363 = vmatprep.subr.mxu0 %v279_v45  ;;  %v210_v16 = vld [vmem:[#allocation6 + $0x38] sm:$0xff]  ;;  %v325_v17 = vld [vmem:[#allocation6 + $0x3c8] sm:$0xff]  ;;  %v209_v18 = vld [vmem:[#allocation6 + $0x30] sm:$0xff] }
  0x36   :  { %426 = vmatprep.subr.mxu1 %v228_v44  ;;  %364 = vmatpush1.msra.mxu0 %v278_v47  ;;  %v324_v19 = vld [vmem:[#allocation6 + $0x3c0] sm:$0xff]  ;;  %v208_v20 = vld [vmem:[#allocation6 + $0x28] sm:$0xff]  ;;  %v323_v21 = vld [vmem:[#allocation6 + $0x3b8] sm:$0xff] }
  0x37   :  { %427 = vmatpush1.msra.mxu1 %v227_v46  ;;  %365 = vmatprep.subr.mxu0 %v277_v49  ;;  %v207_v22 = vld [vmem:[#allocation6 + $0x20] sm:$0xff]  ;;  %v322_v23 = vld [vmem:[#allocation6 + $0x3b0] sm:$0xff]  ;;  %v206_v24 = vld [vmem:[#allocation6 + $0x18] sm:$0xff] }
  0x38   :  { %428 = vmatprep.subr.mxu1 %v226_v48  ;;  %366 = vmatpush1.msra.mxu0 %v276_v51  ;;  %v321_v25 = vld [vmem:[#allocation6 + $0x3a8] sm:$0xff]  ;;  %v205_v26 = vld [vmem:[#allocation6 + $0x10] sm:$0xff]  ;;  %v320_v27 = vld [vmem:[#allocation6 + $0x3a0] sm:$0xff] }
  0x39   :  { %429 = vmatpush1.msra.mxu1 %v225_v50  ;;  %367 = vmatprep.subr.mxu0 %v275_v53  ;;  %v204_v28 = vld [vmem:[#allocation6 + $0x8] sm:$0xff]  ;;  %v319_v29 = vld [vmem:[#allocation6 + $0x398] sm:$0xff]  ;;  %v203_v30 = vld [vmem:[#allocation6] sm:$0xff] }
  0x3a   :  { %430 = vmatprep.subr.mxu1 %v224_v52  ;;  %368 = vmatpush1.msra.mxu0 %v274_v55  ;;  %v318_v31 = vld [vmem:[#allocation6 + $0x390] sm:$0xff]  ;;  %v266_v32 = vld [vmem:[#allocation6 + $0x1f8] sm:$0xff]  ;;  %v317_v33 = vld [vmem:[#allocation6 + $0x388] sm:$0xff] }
  0x3b   :  { %431 = vmatpush1.msra.mxu1 %v223_v54  ;;  %369 = vmatprep.subr.mxu0 %v273_v57  ;;  %v265_v34 = vld [vmem:[#allocation6 + $0x1f0] sm:$0xff]  ;;  %v316_v35 = vld [vmem:[#allocation6 + $0x380] sm:$0xff]  ;;  %v264_v36 = vld [vmem:[#allocation6 + $0x1e8] sm:$0xff] }
  0x3c   :  { %432 = vmatprep.subr.mxu1 %v222_v56  ;;  %370 = vmatpush1.msra.mxu0 %v272_v59  ;;  %v315_v37 = vld [vmem:[#allocation6 + $0x378] sm:$0xff]  ;;  %v263_v38 = vld [vmem:[#allocation6 + $0x1e0] sm:$0xff]  ;;  %v314_v39 = vld [vmem:[#allocation6 + $0x370] sm:$0xff] }
  0x3d   :  { %433 = vmatpush1.msra.mxu1 %v221_v58  ;;  %371 = vmatprep.subr.mxu0 %v271_v61  ;;  %v262_v40 = vld [vmem:[#allocation6 + $0x1d8] sm:$0xff]  ;;  %v313_v41 = vld [vmem:[#allocation6 + $0x368] sm:$0xff]  ;;  %v261_v42 = vld [vmem:[#allocation6 + $0x1d0] sm:$0xff] }
  0x3e   :  { %434 = vmatprep.subr.mxu1 %v220_v60  ;;  %372 = vmatpush1.msra.mxu0 %v270_v63  ;;  %v312_v43 = vld [vmem:[#allocation6 + $0x360] sm:$0xff]  ;;  %v260_v44 = vld [vmem:[#allocation6 + $0x1c8] sm:$0xff]  ;;  %v258_v46 = vld [vmem:[#allocation6 + $0x1b8] sm:$0xff] }
  0x3f   :  { %435 = vmatpush1.msra.mxu1 %v219_v62  ;;  %373 = vmatprep.subr.mxu0 %v269_v1  ;;  %v259_v45 = vld [vmem:[#allocation6 + $0x1c0] sm:$0xff]  ;;  %v257_v47 = vld [vmem:[#allocation6 + $0x1b0] sm:$0xff]  ;;  %v256_v48 = vld [vmem:[#allocation6 + $0x1a8] sm:$0xff] }
  0x40   :  { %436 = vmatprep.subr.mxu1 %v218_v0  ;;  %374 = vmatpush1.msra.mxu0 %v268_v3  ;;  %v255_v49 = vld [vmem:[#allocation6 + $0x1a0] sm:$0xff]  ;;  %v254_v50 = vld [vmem:[#allocation6 + $0x198] sm:$0xff]  ;;  %v253_v51 = vld [vmem:[#allocation6 + $0x190] sm:$0xff] }
  0x41   :  { %437 = vmatpush1.msra.mxu1 %v217_v2  ;;  %375 = vmatprep.subr.mxu0 %v331_v5  ;;  %v252_v52 = vld [vmem:[#allocation6 + $0x188] sm:$0xff]  ;;  %v251_v53 = vld [vmem:[#allocation6 + $0x180] sm:$0xff]  ;;  %v250_v54 = vld [vmem:[#allocation6 + $0x178] sm:$0xff] }
  0x42   :  { %438 = vmatprep.subr.mxu1 %v216_v4  ;;  %376 = vmatpush2.msra.mxu0 %v330_v7  ;;  %v249_v55 = vld [vmem:[#allocation6 + $0x170] sm:$0xff]  ;;  %v311_v56 = vld [vmem:[#allocation6 + $0x358] sm:$0xff]  ;;  %v248_v57 = vld [vmem:[#allocation6 + $0x168] sm:$0xff] }
  0x43   :  { %439 = vmatpush1.msra.mxu1 %v215_v6  ;;  %377 = vmatprep.subr.mxu0 %v329_v9  ;;  %v310_v58 = vld [vmem:[#allocation6 + $0x350] sm:$0xff]  ;;  %v247_v59 = vld [vmem:[#allocation6 + $0x160] sm:$0xff]  ;;  %v309_v60 = vld [vmem:[#allocation6 + $0x348] sm:$0xff] }
  0x44   :  { %440 = vmatprep.subr.mxu1 %v214_v8  ;;  %378 = vmatpush2.msra.mxu0 %v328_v11  ;;  %v246_v61 = vld [vmem:[#allocation6 + $0x158] sm:$0xff]  ;;  %v308_v62 = vld [vmem:[#allocation6 + $0x340] sm:$0xff]  ;;  %v245_v63 = vld [vmem:[#allocation6 + $0x150] sm:$0xff] }
  0x45   :  { %441 = vmatpush1.msra.mxu1 %v213_v10  ;;  %379 = vmatprep.subr.mxu0 %v327_v13  ;;  %v307_v0 = vld [vmem:[#allocation6 + $0x338] sm:$0xff]  ;;  %v244_v1 = vld [vmem:[#allocation6 + $0x148] sm:$0xff]  ;;  %v306_v2 = vld [vmem:[#allocation6 + $0x330] sm:$0xff] }
  0x46   :  { %442 = vmatprep.subr.mxu1 %v212_v12  ;;  %380 = vmatpush2.msra.mxu0 %v326_v15  ;;  %v243_v3 = vld [vmem:[#allocation6 + $0x140] sm:$0xff]  ;;  %v305_v4 = vld [vmem:[#allocation6 + $0x328] sm:$0xff]  ;;  %v242_v5 = vld [vmem:[#allocation6 + $0x138] sm:$0xff] }
  0x47   :  { %443 = vmatpush1.msra.mxu1 %v211_v14  ;;  %381 = vmatprep.subr.mxu0 %v325_v17  ;;  %v304_v6 = vld [vmem:[#allocation6 + $0x320] sm:$0xff]  ;;  %v241_v7 = vld [vmem:[#allocation6 + $0x130] sm:$0xff]  ;;  %v303_v8 = vld [vmem:[#allocation6 + $0x318] sm:$0xff] }
  0x48   :  { %444 = vmatprep.subr.mxu1 %v210_v16  ;;  %382 = vmatpush2.msra.mxu0 %v324_v19  ;;  %v240_v9 = vld [vmem:[#allocation6 + $0x128] sm:$0xff]  ;;  %v302_v10 = vld [vmem:[#allocation6 + $0x310] sm:$0xff]  ;;  %v239_v11 = vld [vmem:[#allocation6 + $0x120] sm:$0xff] }
  0x49   :  { %445 = vmatpush1.msra.mxu1 %v209_v18  ;;  %383 = vmatprep.subr.mxu0 %v323_v21  ;;  %v301_v12 = vld [vmem:[#allocation6 + $0x308] sm:$0xff]  ;;  %v238_v13 = vld [vmem:[#allocation6 + $0x118] sm:$0xff]  ;;  %v300_v14 = vld [vmem:[#allocation6 + $0x300] sm:$0xff] }
  0x4a   :  { %446 = vmatprep.subr.mxu1 %v208_v20  ;;  %384 = vmatpush2.msra.mxu0 %v322_v23  ;;  %v237_v15 = vld [vmem:[#allocation6 + $0x110] sm:$0xff]  ;;  %v236_v16 = vld [vmem:[#allocation6 + $0x108] sm:$0xff]  ;;  %v523_v17 = vld [vmem:[#allocation6 + $0x4f8] sm:$0xff] }
  0x4b   :  { %447 = vmatpush1.msra.mxu1 %v207_v22  ;;  %385 = vmatprep.subr.mxu0 %v321_v25  ;;  %v235_v18 = vld [vmem:[#allocation6 + $0x100] sm:$0xff]  ;;  %v669_v19 = vld [vmem:[#allocation6 + $0x6f8] sm:$0xff] }
  0x4c   :  { %448 = vmatprep.subr.mxu1 %v206_v24  ;;  %386 = vmatpush2.msra.mxu0 %v320_v27 }
  0x4d   :  { %449 = vmatpush1.msra.mxu1 %v205_v26  ;;  %387 = vmatprep.subr.mxu0 %v319_v29 }
  0x4e   :  { %450 = vmatprep.subr.mxu1 %v204_v28  ;;  %388 = vmatpush2.msra.mxu0 %v318_v31 }
  0x4f   :  { %451 = vmatpush1.msra.mxu1 %v203_v30  ;;  %389 = vmatprep.subr.mxu0 %v317_v33 }
  0x50   :  { %452 = vmatprep.subr.mxu1 %v266_v32  ;;  %390 = vmatpush2.msra.mxu0 %v316_v35 }
  0x51   :  { %453 = vmatpush2.msra.mxu1 %v265_v34  ;;  %391 = vmatprep.subr.mxu0 %v315_v37 }
  0x52   :  { %454 = vmatprep.subr.mxu1 %v264_v36  ;;  %392 = vmatpush2.msra.mxu0 %v314_v39 }
  0x53   :  { %455 = vmatpush2.msra.mxu1 %v263_v38  ;;  %393 = vmatprep.subr.mxu0 %v313_v41 }
  0x54   :  { %456 = vmatprep.subr.mxu1 %v262_v40  ;;  %394 = vmatpush2.msra.mxu0 %v312_v43 }
  0x55   :  { %457 = vmatpush2.msra.mxu1 %v261_v42  ;;  %395 = vmatprep.subr.mxu0 %v311_v56 }
  0x56   :  { %458 = vmatprep.subr.mxu1 %v260_v44  ;;  %396 = vmatpush2.msra.mxu0 %v310_v58 }
  0x57   :  { %459 = vmatpush2.msra.mxu1 %v259_v45  ;;  %397 = vmatprep.subr.mxu0 %v309_v60  ;;  %v520_v60 = vld [vmem:[#allocation6 + $0x4e0] sm:$0xff] }
  0x58   :  { %460 = vmatprep.subr.mxu1 %v258_v46  ;;  %398 = vmatpush2.msra.mxu0 %v308_v62  ;;  %v668_v62 = vld [vmem:[#allocation6 + $0x6f0] sm:$0xff] }
  0x59   :  { %461 = vmatpush2.msra.mxu1 %v257_v47  ;;  %399 = vmatprep.subr.mxu0 %v307_v0  ;;  %v522_v47 = vld [vmem:[#allocation6 + $0x4f0] sm:$0xff] }
  0x5a   :  { %462 = vmatprep.subr.mxu1 %v256_v48  ;;  %400 = vmatpush2.msra.mxu0 %v306_v2 }
  0x5b   :  { %463 = vmatpush2.msra.mxu1 %v255_v49  ;;  %401 = vmatprep.subr.mxu0 %v305_v4 }
  0x5c   :  { %464 = vmatprep.subr.mxu1 %v254_v50  ;;  %402 = vmatpush2.msra.mxu0 %v304_v6 }
  0x5d   :  { %465 = vmatpush2.msra.mxu1 %v253_v51  ;;  %403 = vmatprep.subr.mxu0 %v303_v8 }
  0x5e   :  { %466 = vmatprep.subr.mxu1 %v252_v52  ;;  %404 = vmatpush2.msra.mxu0 %v302_v10  ;;  %v521_v52 = vld [vmem:[#allocation6 + $0x4e8] sm:$0xff]  ;;  %v666_v10 = vld [vmem:[#allocation6 + $0x6e0] sm:$0xff] }
  0x5f   :  { %467 = vmatpush2.msra.mxu1 %v251_v53  ;;  %405 = vmatprep.subr.mxu0 %v301_v12 }
  0x60   :  { %468 = vmatprep.subr.mxu1 %v250_v54  ;;  %406 = vmatpush2.msra.mxu0 %v300_v14 }
  0x61   :  { %469 = vmatpush2.msra.mxu1 %v249_v55  ;;  %564 = vmatprep.subr.mxu0 %v523_v17 }
  0x62   :  { %470 = vmatprep.subr.mxu1 %v248_v57 }
  0x63   :  { %471 = vmatpush2.msra.mxu1 %v247_v59 }
  0x64   :  { %472 = vmatprep.subr.mxu1 %v246_v61 }
  0x65   :  { %473 = vmatpush2.msra.mxu1 %v245_v63  ;;  %v519_v63 = vld [vmem:[#allocation6 + $0x4d8] sm:$0xff] }
  0x66   :  { %474 = vmatprep.subr.mxu1 %v244_v1 }
  0x67   :  { %475 = vmatpush2.msra.mxu1 %v243_v3 }
  0x68   :  { %476 = vmatprep.subr.mxu1 %v242_v5  ;;  %v667_v5 = vld [vmem:[#allocation6 + $0x6e8] sm:$0xff] }
  0x69   :  { %477 = vmatpush2.msra.mxu1 %v241_v7 }
  0x6a   :  { %478 = vmatprep.subr.mxu1 %v240_v9  ;;  %v518_v9 = vld [vmem:[#allocation6 + $0x4d0] sm:$0xff] }
  0x6b   :  { %479 = vmatpush2.msra.mxu1 %v239_v11 }
  0x6c   :  { %480 = vmatprep.subr.mxu1 %v238_v13 }
  0x6d   :  { %481 = vmatpush2.msra.mxu1 %v237_v15  ;;  %v517_v15 = vld [vmem:[#allocation6 + $0x4c8] sm:$0xff] }
  0x6e   :  { %482 = vmatprep.subr.mxu1 %v236_v16  ;;  %v665_v16 = vld [vmem:[#allocation6 + $0x6d8] sm:$0xff] }
  0x6f   :  { %483 = vmatpush2.msra.mxu1 %v235_v18 }
  0x70   :  { %710 = vmatprep.subr.mxu1 %v669_v19  ;;  %v516_v19 = vld [vmem:[#allocation6 + $0x4c0] sm:$0xff] }
  0xe8   :  { %v2115_v20 = vpop.f32.mrf.mxu1 }
  0xe9   :  { %v336_v24 = vrot.slane %v2115_v20, 1  ;;  %v556_v25 = vrot.slane %v2115_v20, 2  ;;  %v702_v26 = vrot.slane %v2115_v20, 3  ;;  %v848_v27 = vrot.slane %v2115_v20, 4 }
  0xea   :  { %v2117_v21 = vpop.f32.mrf.mxu1  ;;  %v994_v29 = vrot.slane %v2115_v20, 5  ;;  %v1140_v30 = vrot.slane %v2115_v20, 6  ;;  %v1286_v31 = vrot.slane %v2115_v20, 7 }
  0xeb   :  { %v339_v28 = vrot.slane %v2117_v21, 1  ;;  %v559_v33 = vrot.slane %v2117_v21, 2  ;;  %v705_v34 = vrot.slane %v2117_v21, 3  ;;  %v851_v35 = vrot.slane %v2117_v21, 4 }
  0xec   :  { %v2119_v22 = vpop.f32.mrf.mxu1  ;;  %v997_v36 = vrot.slane %v2117_v21, 5  ;;  %v1143_v40 = vrot.slane %v2117_v21, 6  ;;  %v1289_v3 = vrot.slane %v2117_v21, 7 }
  0xee   :  { %v2121_v23 = vpop.f32.mrf.mxu1 }
  0xf0   :  { %v194_v32 = vpop.f32.mrf.mxu1 }
  0xf1   :  { %v338_v37 = vsel %vm337_vm1, %v194_v32, %v336_v24  ;;  %v557_v38 = vrot.slane %v194_v32, 1  ;;  %v703_v39 = vrot.slane %v194_v32, 2  ;;  %v414_v42 = vrot.slane %v194_v32, 7  ;;  %v663_v24 = vld [vmem:[#allocation6 + $0x6c8] sm:$0xff] }
  0xf2   :  { %v196_v41 = vpop.f32.mrf.mxu1  ;;  %v849_v43 = vrot.slane %v194_v32, 3  ;;  %v995_v44 = vrot.slane %v194_v32, 4  ;;  %v1141_v45 = vrot.slane %v194_v32, 5  ;;  %v1287_v50 = vrot.slane %v194_v32, 6  ;;  %v510_v32 = vld [vmem:[#allocation6 + $0x490] sm:$0xff] }
  0xf3   :  { %v340_v46 = vsel %vm337_vm1, %v196_v41, %v339_v28  ;;  %v416_v48 = vrot.slane %v196_v41, 7  ;;  %v560_v49 = vrot.slane %v196_v41, 1  ;;  %v706_v53 = vrot.slane %v196_v41, 2  ;;  %v661_v28 = vld [vmem:[#allocation6 + $0x6b8] sm:$0xff] }
  0xf4   :  { %v198_v51 = vpop.f32.mrf.mxu1  ;;  %407 = vmatprep.mubr.f32.mxu0 %v340_v46  ;;  %v2139_v54 = vsel %vm337_vm1, %v557_v38, %v556_v25  ;;  %v852_v55 = vrot.slane %v196_v41, 3  ;;  %v2142_v56 = vsel %vm337_vm1, %v703_v39, %v702_v26  ;;  %v998_v61 = vrot.slane %v196_v41, 4  ;;  %v514_v25 = vld [vmem:[#allocation6 + $0x4b0] sm:$0xff]  ;;  %v662_v26 = vld [vmem:[#allocation6 + $0x6c0] sm:$0xff]  ;;  %v507_v38 = vld [vmem:[#allocation6 + $0x478] sm:$0xff] }
  0xf5   :  { %v1436_v57 = vrot.slane %v198_v51, 7  ;;  %408 = vmatmul.mubr.f32.vlgmr.msra.gmra.mxu0 %v338_v37  ;;  %v417_v58 = vsel %vm337_vm1, %v416_v48, %v2117_v21  ;;  %v561_v59 = vsel %vm337_vm1, %v560_v49, %v559_v33  ;;  %v2151_v1 = vsel %vm337_vm1, %v849_v43, %v848_v27  ;;  %v515_v21 = vld [vmem:[#allocation6 + $0x4b8] sm:$0xff]  ;;  %v513_v27 = vld [vmem:[#allocation6 + $0x4a8] sm:$0xff]  ;;  %v658_v33 = vld [vmem:[#allocation6 + $0x6a0] sm:$0xff] }
  0xf6   :  { %565 = vmatpush1.msra.mxu0 %v522_v47  ;;  %484 = vmatprep.mubr.f32.mxu1 %v417_v58  ;;  %v2148_v0 = vsel %vm337_vm1, %v852_v55, %v851_v35  ;;  %v1144_v2 = vrot.slane %v196_v41, 5  ;;  %v415_v4 = vsel %vm337_vm1, %v414_v42, %v2115_v20  ;;  %v2157_v6 = vsel %vm337_vm1, %v998_v61, %v997_v36  ;;  %v664_v20 = vld [vmem:[#allocation6 + $0x6d0] sm:$0xff]  ;;  %v657_v35 = vld [vmem:[#allocation6 + $0x698] sm:$0xff]  ;;  %v508_v36 = vld [vmem:[#allocation6 + $0x480] sm:$0xff] }
  0xf7   :  { %566 = vmatprep.subr.mxu0 %v521_v52  ;;  %628 = vmatprep.mubr.f32.mxu0 %v561_v59  ;;  %v2160_v7 = vsel %vm337_vm1, %v995_v44, %v994_v29  ;;  %v1290_v8 = vrot.slane %v196_v41, 6  ;;  %v2166_v12 = vsel %vm337_vm1, %v1141_v45, %v1140_v30  ;;  %v2169_v13 = vsel %vm337_vm1, %v1287_v50, %v1286_v31  ;;  %v660_v29 = vld [vmem:[#allocation6 + $0x6b0] sm:$0xff]  ;;  %v511_v30 = vld [vmem:[#allocation6 + $0x498] sm:$0xff]  ;;  %v659_v31 = vld [vmem:[#allocation6 + $0x6a8] sm:$0xff] }
  0xf8   :  { %485 = vmatmul.mubr.f32.vlgmr.msra.gmra.mxu1 %v415_v4  ;;  %567 = vmatpush1.msra.mxu0 %v520_v60  ;;  %v2163_v11 = vsel %vm337_vm1, %v1144_v2, %v1143_v40  ;;  %v707_v14 = vsel %vm337_vm1, %v706_v53, %v705_v34  ;;  %v2177_v18 = vsel %vm337_vm1, %v1436_v57, %v2119_v22  ;;  %v512_v22 = vld [vmem:[#allocation6 + $0x4a0] sm:$0xff]  ;;  %v509_v34 = vld [vmem:[#allocation6 + $0x488] sm:$0xff]  ;;  %v656_v37 = vld [vmem:[#allocation6 + $0x690] sm:$0xff] }
  0xf9   :  { %711 = vmatpush1.msra.mxu1 %v668_v62  ;;  %568 = vmatprep.subr.mxu0 %v519_v63  ;;  %v2173_v17 = vsel %vm337_vm1, %v1290_v8, %v1289_v3  ;;  %v655_v39 = vld [vmem:[#allocation6 + $0x688] sm:$0xff]  ;;  %v506_v40 = vld [vmem:[#allocation6 + $0x470] sm:$0xff]  ;;  %v654_v41 = vld [vmem:[#allocation6 + $0x680] sm:$0xff] }
  0xfa   :  { %712 = vmatprep.subr.mxu1 %v667_v5  ;;  %774 = vmatprep.mubr.f32.mxu1 %v707_v14  ;;  %v505_v42 = vld [vmem:[#allocation6 + $0x468] sm:$0xff]  ;;  %v653_v43 = vld [vmem:[#allocation6 + $0x678] sm:$0xff]  ;;  %v504_v44 = vld [vmem:[#allocation6 + $0x460] sm:$0xff] }
  0xfb   :  { %569 = vmatpush1.msra.mxu0 %v518_v9  ;;  %713 = vmatpush1.msra.mxu1 %v666_v10  ;;  %v652_v45 = vld [vmem:[#allocation6 + $0x670] sm:$0xff]  ;;  %v503_v46 = vld [vmem:[#allocation6 + $0x458] sm:$0xff]  ;;  %v651_v47 = vld [vmem:[#allocation6 + $0x668] sm:$0xff] }
  0xfc   :  { %570 = vmatprep.subr.mxu0 %v517_v15  ;;  %714 = vmatprep.subr.mxu1 %v665_v16  ;;  %v502_v48 = vld [vmem:[#allocation6 + $0x450] sm:$0xff]  ;;  %v650_v49 = vld [vmem:[#allocation6 + $0x660] sm:$0xff]  ;;  %v501_v50 = vld [vmem:[#allocation6 + $0x448] sm:$0xff] }
  0xfd   :  { %571 = vmatpush1.msra.mxu0 %v516_v19  ;;  %715 = vmatpush1.msra.mxu1 %v664_v20  ;;  %v649_v51 = vld [vmem:[#allocation6 + $0x658] sm:$0xff]  ;;  %v500_v52 = vld [vmem:[#allocation6 + $0x440] sm:$0xff]  ;;  %v648_v53 = vld [vmem:[#allocation6 + $0x650] sm:$0xff] }
  0xfe   :  { %572 = vmatprep.subr.mxu0 %v515_v21  ;;  %716 = vmatprep.subr.mxu1 %v663_v24  ;;  %v499_v55 = vld [vmem:[#allocation6 + $0x438] sm:$0xff]  ;;  %v647_v57 = vld [vmem:[#allocation6 + $0x648] sm:$0xff]  ;;  %v498_v58 = vld [vmem:[#allocation6 + $0x430] sm:$0xff] }
  0xff   :  { %573 = vmatpush1.msra.mxu0 %v514_v25  ;;  %717 = vmatpush1.msra.mxu1 %v662_v26  ;;  %v646_v59 = vld [vmem:[#allocation6 + $0x640] sm:$0xff]  ;;  %v497_v60 = vld [vmem:[#allocation6 + $0x428] sm:$0xff]  ;;  %v645_v61 = vld [vmem:[#allocation6 + $0x638] sm:$0xff] }
 0x100   :  { %574 = vmatprep.subr.mxu0 %v513_v27  ;;  %718 = vmatprep.subr.mxu1 %v661_v28  ;;  %v496_v62 = vld [vmem:[#allocation6 + $0x420] sm:$0xff]  ;;  %v644_v63 = vld [vmem:[#allocation6 + $0x630] sm:$0xff]  ;;  %v495_v2 = vld [vmem:[#allocation6 + $0x418] sm:$0xff] }
 0x101   :  { %575 = vmatpush1.msra.mxu0 %v512_v22  ;;  %719 = vmatpush1.msra.mxu1 %v660_v29  ;;  %v643_v3 = vld [vmem:[#allocation6 + $0x628] sm:$0xff]  ;;  %v494_v4 = vld [vmem:[#allocation6 + $0x410] sm:$0xff]  ;;  %v642_v5 = vld [vmem:[#allocation6 + $0x620] sm:$0xff] }
 0x102   :  { %576 = vmatprep.subr.mxu0 %v511_v30  ;;  %720 = vmatprep.subr.mxu1 %v659_v31  ;;  %v493_v8 = vld [vmem:[#allocation6 + $0x408] sm:$0xff]  ;;  %v641_v9 = vld [vmem:[#allocation6 + $0x618] sm:$0xff]  ;;  %v492_v10 = vld [vmem:[#allocation6 + $0x400] sm:$0xff] }
 0x103   :  { %577 = vmatpush1.msra.mxu0 %v510_v32  ;;  %721 = vmatpush1.msra.mxu1 %v658_v33  ;;  %v640_v14 = vld [vmem:[#allocation6 + $0x610] sm:$0xff]  ;;  %v555_v15 = vld [vmem:[#allocation6 + $0x5f8] sm:$0xff]  ;;  %v639_v16 = vld [vmem:[#allocation6 + $0x608] sm:$0xff] }
 0x104   :  { %578 = vmatprep.subr.mxu0 %v509_v34  ;;  %722 = vmatprep.subr.mxu1 %v657_v35  ;;  %v554_v19 = vld [vmem:[#allocation6 + $0x5f0] sm:$0xff]  ;;  %v638_v20 = vld [vmem:[#allocation6 + $0x600] sm:$0xff]  ;;  %v553_v21 = vld [vmem:[#allocation6 + $0x5e8] sm:$0xff] }
 0x105   :  { %579 = vmatpush1.msra.mxu0 %v508_v36  ;;  %723 = vmatpush1.msra.mxu1 %v656_v37  ;;  %v701_v24 = vld [vmem:[#allocation6 + $0x7f8] sm:$0xff]  ;;  %v552_v25 = vld [vmem:[#allocation6 + $0x5e0] sm:$0xff]  ;;  %v700_v26 = vld [vmem:[#allocation6 + $0x7f0] sm:$0xff] }
 0x106   :  { %580 = vmatprep.subr.mxu0 %v507_v38  ;;  %724 = vmatprep.subr.mxu1 %v655_v39  ;;  %v551_v27 = vld [vmem:[#allocation6 + $0x5d8] sm:$0xff]  ;;  %v699_v28 = vld [vmem:[#allocation6 + $0x7e8] sm:$0xff]  ;;  %v550_v22 = vld [vmem:[#allocation6 + $0x5d0] sm:$0xff] }
 0x107   :  { %581 = vmatpush1.msra.mxu0 %v506_v40  ;;  %725 = vmatpush1.msra.mxu1 %v654_v41  ;;  %v698_v29 = vld [vmem:[#allocation6 + $0x7e0] sm:$0xff]  ;;  %v549_v30 = vld [vmem:[#allocation6 + $0x5c8] sm:$0xff]  ;;  %v697_v31 = vld [vmem:[#allocation6 + $0x7d8] sm:$0xff] }
 0x108   :  { %582 = vmatprep.subr.mxu0 %v505_v42  ;;  %726 = vmatprep.subr.mxu1 %v653_v43  ;;  %v548_v32 = vld [vmem:[#allocation6 + $0x5c0] sm:$0xff]  ;;  %v696_v33 = vld [vmem:[#allocation6 + $0x7d0] sm:$0xff]  ;;  %v547_v34 = vld [vmem:[#allocation6 + $0x5b8] sm:$0xff] }
 0x109   :  { %583 = vmatpush1.msra.mxu0 %v504_v44  ;;  %727 = vmatpush1.msra.mxu1 %v652_v45  ;;  %v695_v35 = vld [vmem:[#allocation6 + $0x7c8] sm:$0xff]  ;;  %v546_v36 = vld [vmem:[#allocation6 + $0x5b0] sm:$0xff]  ;;  %v694_v37 = vld [vmem:[#allocation6 + $0x7c0] sm:$0xff] }
 0x10a   :  { %584 = vmatprep.subr.mxu0 %v503_v46  ;;  %728 = vmatprep.subr.mxu1 %v651_v47  ;;  %v545_v38 = vld [vmem:[#allocation6 + $0x5a8] sm:$0xff]  ;;  %v693_v39 = vld [vmem:[#allocation6 + $0x7b8] sm:$0xff]  ;;  %v544_v40 = vld [vmem:[#allocation6 + $0x5a0] sm:$0xff] }
 0x10b   :  { %585 = vmatpush1.msra.mxu0 %v502_v48  ;;  %729 = vmatpush1.msra.mxu1 %v650_v49  ;;  %v692_v41 = vld [vmem:[#allocation6 + $0x7b0] sm:$0xff]  ;;  %v543_v42 = vld [vmem:[#allocation6 + $0x598] sm:$0xff]  ;;  %v691_v43 = vld [vmem:[#allocation6 + $0x7a8] sm:$0xff] }
 0x10c   :  { %586 = vmatprep.subr.mxu0 %v501_v50  ;;  %730 = vmatprep.subr.mxu1 %v649_v51  ;;  %v542_v44 = vld [vmem:[#allocation6 + $0x590] sm:$0xff]  ;;  %v690_v45 = vld [vmem:[#allocation6 + $0x7a0] sm:$0xff]  ;;  %v541_v46 = vld [vmem:[#allocation6 + $0x588] sm:$0xff] }
 0x10d   :  { %587 = vmatpush1.msra.mxu0 %v500_v52  ;;  %731 = vmatpush1.msra.mxu1 %v648_v53  ;;  %v689_v47 = vld [vmem:[#allocation6 + $0x798] sm:$0xff]  ;;  %v540_v48 = vld [vmem:[#allocation6 + $0x580] sm:$0xff]  ;;  %v688_v49 = vld [vmem:[#allocation6 + $0x790] sm:$0xff] }
 0x10e   :  { %588 = vmatprep.subr.mxu0 %v499_v55  ;;  %732 = vmatprep.subr.mxu1 %v647_v57  ;;  %v539_v50 = vld [vmem:[#allocation6 + $0x578] sm:$0xff]  ;;  %v687_v51 = vld [vmem:[#allocation6 + $0x788] sm:$0xff]  ;;  %v538_v52 = vld [vmem:[#allocation6 + $0x570] sm:$0xff] }
 0x10f   :  { %589 = vmatpush1.msra.mxu0 %v498_v58  ;;  %733 = vmatpush1.msra.mxu1 %v646_v59  ;;  %v686_v53 = vld [vmem:[#allocation6 + $0x780] sm:$0xff]  ;;  %v537_v55 = vld [vmem:[#allocation6 + $0x568] sm:$0xff]  ;;  %v685_v57 = vld [vmem:[#allocation6 + $0x778] sm:$0xff] }
 0x110   :  { %590 = vmatprep.subr.mxu0 %v497_v60  ;;  %734 = vmatprep.subr.mxu1 %v645_v61  ;;  %v536_v58 = vld [vmem:[#allocation6 + $0x560] sm:$0xff]  ;;  %v684_v59 = vld [vmem:[#allocation6 + $0x770] sm:$0xff]  ;;  %v535_v60 = vld [vmem:[#allocation6 + $0x558] sm:$0xff] }
 0x111   :  { %591 = vmatpush1.msra.mxu0 %v496_v62  ;;  %735 = vmatpush1.msra.mxu1 %v644_v63  ;;  %v683_v61 = vld [vmem:[#allocation6 + $0x768] sm:$0xff]  ;;  %v534_v62 = vld [vmem:[#allocation6 + $0x550] sm:$0xff]  ;;  %v682_v63 = vld [vmem:[#allocation6 + $0x760] sm:$0xff] }
 0x112   :  { %592 = vmatprep.subr.mxu0 %v495_v2  ;;  %736 = vmatprep.subr.mxu1 %v643_v3  ;;  %v533_v2 = vld [vmem:[#allocation6 + $0x548] sm:$0xff]  ;;  %v681_v3 = vld [vmem:[#allocation6 + $0x758] sm:$0xff] }
 0x113   :  { %593 = vmatpush1.msra.mxu0 %v494_v4  ;;  %737 = vmatpush1.msra.mxu1 %v642_v5  ;;  %v532_v4 = vld [vmem:[#allocation6 + $0x540] sm:$0xff]  ;;  %v680_v5 = vld [vmem:[#allocation6 + $0x750] sm:$0xff] }
 0x114   :  { %594 = vmatprep.subr.mxu0 %v493_v8  ;;  %738 = vmatprep.subr.mxu1 %v641_v9  ;;  %v531_v8 = vld [vmem:[#allocation6 + $0x538] sm:$0xff]  ;;  %v679_v9 = vld [vmem:[#allocation6 + $0x748] sm:$0xff] }
 0x115   :  { %595 = vmatpush1.msra.mxu0 %v492_v10  ;;  %739 = vmatpush1.msra.mxu1 %v640_v14  ;;  %v530_v10 = vld [vmem:[#allocation6 + $0x530] sm:$0xff]  ;;  %v678_v14 = vld [vmem:[#allocation6 + $0x740] sm:$0xff] }
 0x116   :  { %596 = vmatprep.subr.mxu0 %v555_v15  ;;  %740 = vmatprep.subr.mxu1 %v639_v16  ;;  %v529_v15 = vld [vmem:[#allocation6 + $0x528] sm:$0xff]  ;;  %v677_v16 = vld [vmem:[#allocation6 + $0x738] sm:$0xff] }
 0x117   :  { %597 = vmatpush2.msra.mxu0 %v554_v19  ;;  %741 = vmatpush1.msra.mxu1 %v638_v20  ;;  %v528_v19 = vld [vmem:[#allocation6 + $0x520] sm:$0xff]  ;;  %v676_v20 = vld [vmem:[#allocation6 + $0x730] sm:$0xff] }
 0x118   :  { %598 = vmatprep.subr.mxu0 %v553_v21  ;;  %742 = vmatprep.subr.mxu1 %v701_v24  ;;  %v527_v21 = vld [vmem:[#allocation6 + $0x518] sm:$0xff]  ;;  %v675_v24 = vld [vmem:[#allocation6 + $0x728] sm:$0xff] }
 0x119   :  { %599 = vmatpush2.msra.mxu0 %v552_v25  ;;  %743 = vmatpush2.msra.mxu1 %v700_v26  ;;  %v526_v25 = vld [vmem:[#allocation6 + $0x510] sm:$0xff]  ;;  %v674_v26 = vld [vmem:[#allocation6 + $0x720] sm:$0xff] }
 0x11a   :  { %600 = vmatprep.subr.mxu0 %v551_v27  ;;  %744 = vmatprep.subr.mxu1 %v699_v28  ;;  %v525_v27 = vld [vmem:[#allocation6 + $0x508] sm:$0xff]  ;;  %v673_v28 = vld [vmem:[#allocation6 + $0x718] sm:$0xff] }
 0x11b   :  { %601 = vmatpush2.msra.mxu0 %v550_v22  ;;  %745 = vmatpush2.msra.mxu1 %v698_v29  ;;  %v524_v22 = vld [vmem:[#allocation6 + $0x500] sm:$0xff]  ;;  %v672_v29 = vld [vmem:[#allocation6 + $0x710] sm:$0xff] }
 0x11c   :  { %602 = vmatprep.subr.mxu0 %v549_v30  ;;  %746 = vmatprep.subr.mxu1 %v697_v31  ;;  %v671_v30 = vld [vmem:[#allocation6 + $0x708] sm:$0xff]  ;;  %v815_v31 = vld [vmem:[#allocation6 + $0x8f8] sm:$0xff] }
 0x11d   :  { %603 = vmatpush2.msra.mxu0 %v548_v32  ;;  %747 = vmatpush2.msra.mxu1 %v696_v33  ;;  %v670_v32 = vld [vmem:[#allocation6 + $0x700] sm:$0xff]  ;;  %v814_v33 = vld [vmem:[#allocation6 + $0x8f0] sm:$0xff] }
 0x11e   :  { %604 = vmatprep.subr.mxu0 %v547_v34  ;;  %748 = vmatprep.subr.mxu1 %v695_v35  ;;  %v813_v34 = vld [vmem:[#allocation6 + $0x8e8] sm:$0xff]  ;;  %v961_v35 = vld [vmem:[#allocation6 + $0xaf8] sm:$0xff] }
 0x11f   :  { %605 = vmatpush2.msra.mxu0 %v546_v36  ;;  %749 = vmatpush2.msra.mxu1 %v694_v37  ;;  %v812_v36 = vld [vmem:[#allocation6 + $0x8e0] sm:$0xff]  ;;  %v960_v37 = vld [vmem:[#allocation6 + $0xaf0] sm:$0xff] }
 0x120   :  { %606 = vmatprep.subr.mxu0 %v545_v38  ;;  %750 = vmatprep.subr.mxu1 %v693_v39  ;;  %v811_v38 = vld [vmem:[#allocation6 + $0x8d8] sm:$0xff]  ;;  %v959_v39 = vld [vmem:[#allocation6 + $0xae8] sm:$0xff] }
 0x121   :  { %607 = vmatpush2.msra.mxu0 %v544_v40  ;;  %751 = vmatpush2.msra.mxu1 %v692_v41  ;;  %v810_v40 = vld [vmem:[#allocation6 + $0x8d0] sm:$0xff]  ;;  %v958_v41 = vld [vmem:[#allocation6 + $0xae0] sm:$0xff] }
 0x122   :  { %608 = vmatprep.subr.mxu0 %v543_v42  ;;  %752 = vmatprep.subr.mxu1 %v691_v43  ;;  %v957_v42 = vld [vmem:[#allocation6 + $0xad8] sm:$0xff]  ;;  %v808_v43 = vld [vmem:[#allocation6 + $0x8c0] sm:$0xff] }
 0x123   :  { %609 = vmatpush2.msra.mxu0 %v542_v44  ;;  %753 = vmatpush2.msra.mxu1 %v690_v45  ;;  %v956_v44 = vld [vmem:[#allocation6 + $0xad0] sm:$0xff] }
 0x124   :  { %610 = vmatprep.subr.mxu0 %v541_v46  ;;  %754 = vmatprep.subr.mxu1 %v689_v47  ;;  %v806_v45 = vld [vmem:[#allocation6 + $0x8b0] sm:$0xff]  ;;  %v954_v46 = vld [vmem:[#allocation6 + $0xac0] sm:$0xff]  ;;  %v805_v47 = vld [vmem:[#allocation6 + $0x8a8] sm:$0xff] }
 0x125   :  { %611 = vmatpush2.msra.mxu0 %v540_v48  ;;  %755 = vmatpush2.msra.mxu1 %v688_v49  ;;  %v953_v48 = vld [vmem:[#allocation6 + $0xab8] sm:$0xff]  ;;  %v952_v49 = vld [vmem:[#allocation6 + $0xab0] sm:$0xff] }
 0x126   :  { %612 = vmatprep.subr.mxu0 %v539_v50  ;;  %756 = vmatprep.subr.mxu1 %v687_v51  ;;  %v803_v50 = vld [vmem:[#allocation6 + $0x898] sm:$0xff]  ;;  %v951_v51 = vld [vmem:[#allocation6 + $0xaa8] sm:$0xff] }
 0x127   :  { %613 = vmatpush2.msra.mxu0 %v538_v52  ;;  %757 = vmatpush2.msra.mxu1 %v686_v53  ;;  %v802_v52 = vld [vmem:[#allocation6 + $0x890] sm:$0xff]  ;;  %v950_v53 = vld [vmem:[#allocation6 + $0xaa0] sm:$0xff] }
 0x128   :  { %614 = vmatprep.subr.mxu0 %v537_v55  ;;  %758 = vmatprep.subr.mxu1 %v685_v57  ;;  %v801_v55 = vld [vmem:[#allocation6 + $0x888] sm:$0xff]  ;;  %v949_v57 = vld [vmem:[#allocation6 + $0xa98] sm:$0xff] }
 0x129   :  { %615 = vmatpush2.msra.mxu0 %v536_v58  ;;  %759 = vmatpush2.msra.mxu1 %v684_v59  ;;  %v800_v58 = vld [vmem:[#allocation6 + $0x880] sm:$0xff]  ;;  %v948_v59 = vld [vmem:[#allocation6 + $0xa90] sm:$0xff] }
 0x12a   :  { %616 = vmatprep.subr.mxu0 %v535_v60  ;;  %760 = vmatprep.subr.mxu1 %v683_v61  ;;  %v799_v60 = vld [vmem:[#allocation6 + $0x878] sm:$0xff]  ;;  %v947_v61 = vld [vmem:[#allocation6 + $0xa88] sm:$0xff] }
 0x12b   :  { %617 = vmatpush2.msra.mxu0 %v534_v62  ;;  %761 = vmatpush2.msra.mxu1 %v682_v63  ;;  %v798_v62 = vld [vmem:[#allocation6 + $0x870] sm:$0xff]  ;;  %v946_v63 = vld [vmem:[#allocation6 + $0xa80] sm:$0xff] }
 0x12c   :  { %618 = vmatprep.subr.mxu0 %v533_v2  ;;  %762 = vmatprep.subr.mxu1 %v681_v3  ;;  %v797_v2 = vld [vmem:[#allocation6 + $0x868] sm:$0xff]  ;;  %v945_v3 = vld [vmem:[#allocation6 + $0xa78] sm:$0xff] }
 0x12d   :  { %619 = vmatpush2.msra.mxu0 %v532_v4  ;;  %763 = vmatpush2.msra.mxu1 %v680_v5  ;;  %v796_v4 = vld [vmem:[#allocation6 + $0x860] sm:$0xff]  ;;  %v944_v5 = vld [vmem:[#allocation6 + $0xa70] sm:$0xff] }
 0x12e   :  { %620 = vmatprep.subr.mxu0 %v531_v8  ;;  %764 = vmatprep.subr.mxu1 %v679_v9  ;;  %v795_v8 = vld [vmem:[#allocation6 + $0x858] sm:$0xff]  ;;  %v943_v9 = vld [vmem:[#allocation6 + $0xa68] sm:$0xff] }
 0x12f   :  { %621 = vmatpush2.msra.mxu0 %v530_v10  ;;  %765 = vmatpush2.msra.mxu1 %v678_v14  ;;  %v794_v10 = vld [vmem:[#allocation6 + $0x850] sm:$0xff]  ;;  %v942_v14 = vld [vmem:[#allocation6 + $0xa60] sm:$0xff] }
 0x130   :  { %622 = vmatprep.subr.mxu0 %v529_v15  ;;  %766 = vmatprep.subr.mxu1 %v677_v16  ;;  %v793_v15 = vld [vmem:[#allocation6 + $0x848] sm:$0xff]  ;;  %v941_v16 = vld [vmem:[#allocation6 + $0xa58] sm:$0xff] }
 0x131   :  { %623 = vmatpush2.msra.mxu0 %v528_v19  ;;  %767 = vmatpush2.msra.mxu1 %v676_v20  ;;  %v792_v19 = vld [vmem:[#allocation6 + $0x840] sm:$0xff]  ;;  %v940_v20 = vld [vmem:[#allocation6 + $0xa50] sm:$0xff] }
 0x132   :  { %624 = vmatprep.subr.mxu0 %v527_v21  ;;  %768 = vmatprep.subr.mxu1 %v675_v24  ;;  %v791_v21 = vld [vmem:[#allocation6 + $0x838] sm:$0xff]  ;;  %v939_v24 = vld [vmem:[#allocation6 + $0xa48] sm:$0xff] }
 0x133   :  { %625 = vmatpush2.msra.mxu0 %v526_v25  ;;  %769 = vmatpush2.msra.mxu1 %v674_v26  ;;  %v790_v25 = vld [vmem:[#allocation6 + $0x830] sm:$0xff]  ;;  %v938_v26 = vld [vmem:[#allocation6 + $0xa40] sm:$0xff] }
 0x134   :  { %626 = vmatprep.subr.mxu0 %v525_v27  ;;  %770 = vmatprep.subr.mxu1 %v673_v28  ;;  %v789_v27 = vld [vmem:[#allocation6 + $0x828] sm:$0xff]  ;;  %v937_v28 = vld [vmem:[#allocation6 + $0xa38] sm:$0xff] }
 0x135   :  { %627 = vmatpush2.msra.mxu0 %v524_v22  ;;  %771 = vmatpush2.msra.mxu1 %v672_v29  ;;  %v788_v22 = vld [vmem:[#allocation6 + $0x820] sm:$0xff]  ;;  %v936_v29 = vld [vmem:[#allocation6 + $0xa30] sm:$0xff] }
 0x136   :  { %629 = vmatmul.mubr.f32.vlgmr.msra.gmra.mxu0 %v2139_v54  ;;  %772 = vmatprep.subr.mxu1 %v671_v30  ;;  %v809_v54 = vld [vmem:[#allocation6 + $0x8c8] sm:$0xff]  ;;  %v787_v30 = vld [vmem:[#allocation6 + $0x818] sm:$0xff] }
 0x137   :  { %856 = vmatprep.subr.mxu0 %v815_v31  ;;  %773 = vmatpush2.msra.mxu1 %v670_v32  ;;  %v935_v31 = vld [vmem:[#allocation6 + $0xa28] sm:$0xff]  ;;  %v786_v32 = vld [vmem:[#allocation6 + $0x810] sm:$0xff] }
 0x138   :  { %857 = vmatpush1.msra.mxu0 %v814_v33  ;;  %920 = vmatprep.mubr.f32.mxu0 %v2148_v0  ;;  %v807_v0 = vld [vmem:[#allocation6 + $0x8b8] sm:$0xff]  ;;  %v934_v33 = vld [vmem:[#allocation6 + $0xa20] sm:$0xff] }
 0x139   :  { %775 = vmatmul.mubr.f32.vlgmr.msra.gmra.mxu1 %v2142_v56  ;;  %858 = vmatprep.subr.mxu0 %v813_v34  ;;  %v955_v56 = vld [vmem:[#allocation6 + $0xac8] sm:$0xff] }
 0x13a   :  { %1002 = vmatprep.subr.mxu1 %v961_v35  ;;  %859 = vmatpush1.msra.mxu0 %v812_v36  ;;  %v785_v34 = vld [vmem:[#allocation6 + $0x808] sm:$0xff]  ;;  %v933_v35 = vld [vmem:[#allocation6 + $0xa18] sm:$0xff]  ;;  %v784_v36 = vld [vmem:[#allocation6 + $0x800] sm:$0xff] }
 0x13b   :  { %1003 = vmatpush1.msra.mxu1 %v960_v37  ;;  %1066 = vmatprep.mubr.f32.mxu1 %v2157_v6  ;;  %v804_v6 = vld [vmem:[#allocation6 + $0x8a0] sm:$0xff]  ;;  %v932_v37 = vld [vmem:[#allocation6 + $0xa10] sm:$0xff] }
 0x13c   :  { %860 = vmatprep.subr.mxu0 %v811_v38  ;;  %1004 = vmatprep.subr.mxu1 %v959_v39  ;;  %v847_v38 = vld [vmem:[#allocation6 + $0x9f8] sm:$0xff]  ;;  %v931_v39 = vld [vmem:[#allocation6 + $0xa08] sm:$0xff] }
 0x13d   :  { %861 = vmatpush1.msra.mxu0 %v810_v40  ;;  %1005 = vmatpush1.msra.mxu1 %v958_v41  ;;  %v846_v40 = vld [vmem:[#allocation6 + $0x9f0] sm:$0xff]  ;;  %v930_v41 = vld [vmem:[#allocation6 + $0xa00] sm:$0xff] }
 0x13e   :  { %862 = vmatprep.subr.mxu0 %v809_v54  ;;  %1006 = vmatprep.subr.mxu1 %v957_v42  ;;  %v845_v54 = vld [vmem:[#allocation6 + $0x9e8] sm:$0xff]  ;;  %v993_v42 = vld [vmem:[#allocation6 + $0xbf8] sm:$0xff] }
 0x13f   :  { %863 = vmatpush1.msra.mxu0 %v808_v43  ;;  %1007 = vmatpush1.msra.mxu1 %v956_v44  ;;  %v844_v43 = vld [vmem:[#allocation6 + $0x9e0] sm:$0xff]  ;;  %v992_v44 = vld [vmem:[#allocation6 + $0xbf0] sm:$0xff] }
 0x140   :  { %864 = vmatprep.subr.mxu0 %v807_v0  ;;  %1008 = vmatprep.subr.mxu1 %v955_v56  ;;  %v843_v0 = vld [vmem:[#allocation6 + $0x9d8] sm:$0xff]  ;;  %v991_v56 = vld [vmem:[#allocation6 + $0xbe8] sm:$0xff] }
 0x141   :  { %865 = vmatpush1.msra.mxu0 %v806_v45  ;;  %1009 = vmatpush1.msra.mxu1 %v954_v46  ;;  %v842_v45 = vld [vmem:[#allocation6 + $0x9d0] sm:$0xff]  ;;  %v990_v46 = vld [vmem:[#allocation6 + $0xbe0] sm:$0xff] }
 0x142   :  { %866 = vmatprep.subr.mxu0 %v805_v47  ;;  %1010 = vmatprep.subr.mxu1 %v953_v48  ;;  %v841_v47 = vld [vmem:[#allocation6 + $0x9c8] sm:$0xff]  ;;  %v989_v48 = vld [vmem:[#allocation6 + $0xbd8] sm:$0xff] }
 0x143   :  { %867 = vmatpush1.msra.mxu0 %v804_v6  ;;  %1011 = vmatpush1.msra.mxu1 %v952_v49  ;;  %v840_v6 = vld [vmem:[#allocation6 + $0x9c0] sm:$0xff]  ;;  %v988_v49 = vld [vmem:[#allocation6 + $0xbd0] sm:$0xff] }
 0x144   :  { %868 = vmatprep.subr.mxu0 %v803_v50  ;;  %1012 = vmatprep.subr.mxu1 %v951_v51  ;;  %v839_v50 = vld [vmem:[#allocation6 + $0x9b8] sm:$0xff]  ;;  %v987_v51 = vld [vmem:[#allocation6 + $0xbc8] sm:$0xff] }
 0x145   :  { %869 = vmatpush1.msra.mxu0 %v802_v52  ;;  %1013 = vmatpush1.msra.mxu1 %v950_v53  ;;  %v838_v52 = vld [vmem:[#allocation6 + $0x9b0] sm:$0xff]  ;;  %v986_v53 = vld [vmem:[#allocation6 + $0xbc0] sm:$0xff] }
 0x146   :  { %870 = vmatprep.subr.mxu0 %v801_v55  ;;  %1014 = vmatprep.subr.mxu1 %v949_v57  ;;  %v837_v55 = vld [vmem:[#allocation6 + $0x9a8] sm:$0xff]  ;;  %v985_v57 = vld [vmem:[#allocation6 + $0xbb8] sm:$0xff] }
 0x147   :  { %871 = vmatpush1.msra.mxu0 %v800_v58  ;;  %1015 = vmatpush1.msra.mxu1 %v948_v59  ;;  %v836_v58 = vld [vmem:[#allocation6 + $0x9a0] sm:$0xff]  ;;  %v984_v59 = vld [vmem:[#allocation6 + $0xbb0] sm:$0xff] }
 0x148   :  { %872 = vmatprep.subr.mxu0 %v799_v60  ;;  %1016 = vmatprep.subr.mxu1 %v947_v61  ;;  %v835_v60 = vld [vmem:[#allocation6 + $0x998] sm:$0xff]  ;;  %v983_v61 = vld [vmem:[#allocation6 + $0xba8] sm:$0xff] }
 0x149   :  { %873 = vmatpush1.msra.mxu0 %v798_v62  ;;  %1017 = vmatpush1.msra.mxu1 %v946_v63  ;;  %v834_v62 = vld [vmem:[#allocation6 + $0x990] sm:$0xff]  ;;  %v982_v63 = vld [vmem:[#allocation6 + $0xba0] sm:$0xff] }
 0x14a   :  { %874 = vmatprep.subr.mxu0 %v797_v2  ;;  %1018 = vmatprep.subr.mxu1 %v945_v3  ;;  %v833_v2 = vld [vmem:[#allocation6 + $0x988] sm:$0xff]  ;;  %v981_v3 = vld [vmem:[#allocation6 + $0xb98] sm:$0xff] }
 0x14b   :  { %875 = vmatpush1.msra.mxu0 %v796_v4  ;;  %1019 = vmatpush1.msra.mxu1 %v944_v5  ;;  %v832_v4 = vld [vmem:[#allocation6 + $0x980] sm:$0xff]  ;;  %v980_v5 = vld [vmem:[#allocation6 + $0xb90] sm:$0xff] }
 0x14c   :  { %876 = vmatprep.subr.mxu0 %v795_v8  ;;  %1020 = vmatprep.subr.mxu1 %v943_v9  ;;  %v831_v8 = vld [vmem:[#allocation6 + $0x978] sm:$0xff]  ;;  %v979_v9 = vld [vmem:[#allocation6 + $0xb88] sm:$0xff] }
 0x14d   :  { %877 = vmatpush1.msra.mxu0 %v794_v10  ;;  %1021 = vmatpush1.msra.mxu1 %v942_v14  ;;  %v830_v10 = vld [vmem:[#allocation6 + $0x970] sm:$0xff]  ;;  %v978_v14 = vld [vmem:[#allocation6 + $0xb80] sm:$0xff] }
 0x14e   :  { %878 = vmatprep.subr.mxu0 %v793_v15  ;;  %1022 = vmatprep.subr.mxu1 %v941_v16  ;;  %v829_v15 = vld [vmem:[#allocation6 + $0x968] sm:$0xff]  ;;  %v977_v16 = vld [vmem:[#allocation6 + $0xb78] sm:$0xff] }
 0x14f   :  { %879 = vmatpush1.msra.mxu0 %v792_v19  ;;  %1023 = vmatpush1.msra.mxu1 %v940_v20  ;;  %v828_v19 = vld [vmem:[#allocation6 + $0x960] sm:$0xff]  ;;  %v976_v20 = vld [vmem:[#allocation6 + $0xb70] sm:$0xff] }
 0x150   :  { %880 = vmatprep.subr.mxu0 %v791_v21  ;;  %1024 = vmatprep.subr.mxu1 %v939_v24  ;;  %v827_v21 = vld [vmem:[#allocation6 + $0x958] sm:$0xff]  ;;  %v975_v24 = vld [vmem:[#allocation6 + $0xb68] sm:$0xff] }
 0x151   :  { %881 = vmatpush1.msra.mxu0 %v790_v25  ;;  %1025 = vmatpush1.msra.mxu1 %v938_v26  ;;  %v826_v25 = vld [vmem:[#allocation6 + $0x950] sm:$0xff]  ;;  %v974_v26 = vld [vmem:[#allocation6 + $0xb60] sm:$0xff] }
 0x152   :  { %882 = vmatprep.subr.mxu0 %v789_v27  ;;  %1026 = vmatprep.subr.mxu1 %v937_v28  ;;  %v825_v27 = vld [vmem:[#allocation6 + $0x948] sm:$0xff]  ;;  %v973_v28 = vld [vmem:[#allocation6 + $0xb58] sm:$0xff] }
 0x153   :  { %883 = vmatpush1.msra.mxu0 %v788_v22  ;;  %1027 = vmatpush1.msra.mxu1 %v936_v29  ;;  %v824_v22 = vld [vmem:[#allocation6 + $0x940] sm:$0xff]  ;;  %v972_v29 = vld [vmem:[#allocation6 + $0xb50] sm:$0xff] }
 0x154   :  { %884 = vmatprep.subr.mxu0 %v787_v30  ;;  %1028 = vmatprep.subr.mxu1 %v935_v31  ;;  %v823_v30 = vld [vmem:[#allocation6 + $0x938] sm:$0xff]  ;;  %v971_v31 = vld [vmem:[#allocation6 + $0xb48] sm:$0xff] }
 0x155   :  { %885 = vmatpush1.msra.mxu0 %v786_v32  ;;  %1029 = vmatpush1.msra.mxu1 %v934_v33  ;;  %v822_v32 = vld [vmem:[#allocation6 + $0x930] sm:$0xff]  ;;  %v970_v33 = vld [vmem:[#allocation6 + $0xb40] sm:$0xff] }
 0x156   :  { %886 = vmatprep.subr.mxu0 %v785_v34  ;;  %1030 = vmatprep.subr.mxu1 %v933_v35  ;;  %v821_v34 = vld [vmem:[#allocation6 + $0x928] sm:$0xff]  ;;  %v969_v35 = vld [vmem:[#allocation6 + $0xb38] sm:$0xff] }
 0x157   :  { %887 = vmatpush1.msra.mxu0 %v784_v36  ;;  %1031 = vmatpush1.msra.mxu1 %v932_v37  ;;  %v820_v36 = vld [vmem:[#allocation6 + $0x920] sm:$0xff]  ;;  %v968_v37 = vld [vmem:[#allocation6 + $0xb30] sm:$0xff] }
 0x158   :  { %888 = vmatprep.subr.mxu0 %v847_v38  ;;  %1032 = vmatprep.subr.mxu1 %v931_v39  ;;  %v819_v38 = vld [vmem:[#allocation6 + $0x918] sm:$0xff]  ;;  %v967_v39 = vld [vmem:[#allocation6 + $0xb28] sm:$0xff] }
 0x159   :  { %889 = vmatpush2.msra.mxu0 %v846_v40  ;;  %1033 = vmatpush1.msra.mxu1 %v930_v41  ;;  %v818_v40 = vld [vmem:[#allocation6 + $0x910] sm:$0xff]  ;;  %v966_v41 = vld [vmem:[#allocation6 + $0xb20] sm:$0xff] }
 0x15a   :  { %890 = vmatprep.subr.mxu0 %v845_v54  ;;  %1034 = vmatprep.subr.mxu1 %v993_v42  ;;  %v817_v54 = vld [vmem:[#allocation6 + $0x908] sm:$0xff]  ;;  %v965_v42 = vld [vmem:[#allocation6 + $0xb18] sm:$0xff] }
 0x15b   :  { %891 = vmatpush2.msra.mxu0 %v844_v43  ;;  %1035 = vmatpush2.msra.mxu1 %v992_v44  ;;  %v816_v43 = vld [vmem:[#allocation6 + $0x900] sm:$0xff]  ;;  %v964_v44 = vld [vmem:[#allocation6 + $0xb10] sm:$0xff] }
 0x15c   :  { %892 = vmatprep.subr.mxu0 %v843_v0  ;;  %1036 = vmatprep.subr.mxu1 %v991_v56  ;;  %v963_v0 = vld [vmem:[#allocation6 + $0xb08] sm:$0xff]  ;;  %v1107_v56 = vld [vmem:[#allocation6 + $0xcf8] sm:$0xff] }
 0x15d   :  { %893 = vmatpush2.msra.mxu0 %v842_v45  ;;  %1037 = vmatpush2.msra.mxu1 %v990_v46  ;;  %v962_v45 = vld [vmem:[#allocation6 + $0xb00] sm:$0xff]  ;;  %v1106_v46 = vld [vmem:[#allocation6 + $0xcf0] sm:$0xff] }
 0x15e   :  { %894 = vmatprep.subr.mxu0 %v841_v47  ;;  %1038 = vmatprep.subr.mxu1 %v989_v48  ;;  %v1105_v47 = vld [vmem:[#allocation6 + $0xce8] sm:$0xff]  ;;  %v1253_v48 = vld [vmem:[#allocation6 + $0xef8] sm:$0xff] }
 0x15f   :  { %895 = vmatpush2.msra.mxu0 %v840_v6  ;;  %1039 = vmatpush2.msra.mxu1 %v988_v49  ;;  %v1104_v6 = vld [vmem:[#allocation6 + $0xce0] sm:$0xff]  ;;  %v1252_v49 = vld [vmem:[#allocation6 + $0xef0] sm:$0xff] }
 0x160   :  { %896 = vmatprep.subr.mxu0 %v839_v50  ;;  %1040 = vmatprep.subr.mxu1 %v987_v51  ;;  %v1103_v50 = vld [vmem:[#allocation6 + $0xcd8] sm:$0xff]  ;;  %v1251_v51 = vld [vmem:[#allocation6 + $0xee8] sm:$0xff] }
 0x161   :  { %897 = vmatpush2.msra.mxu0 %v838_v52  ;;  %1041 = vmatpush2.msra.mxu1 %v986_v53  ;;  %v1102_v52 = vld [vmem:[#allocation6 + $0xcd0] sm:$0xff]  ;;  %v1250_v53 = vld [vmem:[#allocation6 + $0xee0] sm:$0xff] }
 0x162   :  { %898 = vmatprep.subr.mxu0 %v837_v55  ;;  %1042 = vmatprep.subr.mxu1 %v985_v57  ;;  %v1249_v55 = vld [vmem:[#allocation6 + $0xed8] sm:$0xff]  ;;  %v1100_v57 = vld [vmem:[#allocation6 + $0xcc0] sm:$0xff] }
 0x163   :  { %899 = vmatpush2.msra.mxu0 %v836_v58  ;;  %1043 = vmatpush2.msra.mxu1 %v984_v59  ;;  %v1248_v58 = vld [vmem:[#allocation6 + $0xed0] sm:$0xff] }
 0x164   :  { %900 = vmatprep.subr.mxu0 %v835_v60  ;;  %1044 = vmatprep.subr.mxu1 %v983_v61  ;;  %v1098_v59 = vld [vmem:[#allocation6 + $0xcb0] sm:$0xff]  ;;  %v1246_v60 = vld [vmem:[#allocation6 + $0xec0] sm:$0xff]  ;;  %v1097_v61 = vld [vmem:[#allocation6 + $0xca8] sm:$0xff] }
 0x165   :  { %901 = vmatpush2.msra.mxu0 %v834_v62  ;;  %1045 = vmatpush2.msra.mxu1 %v982_v63  ;;  %v1245_v62 = vld [vmem:[#allocation6 + $0xeb8] sm:$0xff]  ;;  %v1244_v63 = vld [vmem:[#allocation6 + $0xeb0] sm:$0xff] }
 0x166   :  { %902 = vmatprep.subr.mxu0 %v833_v2  ;;  %1046 = vmatprep.subr.mxu1 %v981_v3  ;;  %v1095_v2 = vld [vmem:[#allocation6 + $0xc98] sm:$0xff]  ;;  %v1243_v3 = vld [vmem:[#allocation6 + $0xea8] sm:$0xff] }
 0x167   :  { %903 = vmatpush2.msra.mxu0 %v832_v4  ;;  %1047 = vmatpush2.msra.mxu1 %v980_v5  ;;  %v1094_v4 = vld [vmem:[#allocation6 + $0xc90] sm:$0xff]  ;;  %v1242_v5 = vld [vmem:[#allocation6 + $0xea0] sm:$0xff] }
 0x168   :  { %904 = vmatprep.subr.mxu0 %v831_v8  ;;  %1048 = vmatprep.subr.mxu1 %v979_v9  ;;  %v1093_v8 = vld [vmem:[#allocation6 + $0xc88] sm:$0xff]  ;;  %v1241_v9 = vld [vmem:[#allocation6 + $0xe98] sm:$0xff] }
 0x169   :  { %905 = vmatpush2.msra.mxu0 %v830_v10  ;;  %1049 = vmatpush2.msra.mxu1 %v978_v14  ;;  %v1092_v10 = vld [vmem:[#allocation6 + $0xc80] sm:$0xff]  ;;  %v1240_v14 = vld [vmem:[#allocation6 + $0xe90] sm:$0xff] }
 0x16a   :  { %906 = vmatprep.subr.mxu0 %v829_v15  ;;  %1050 = vmatprep.subr.mxu1 %v977_v16  ;;  %v1091_v15 = vld [vmem:[#allocation6 + $0xc78] sm:$0xff]  ;;  %v1239_v16 = vld [vmem:[#allocation6 + $0xe88] sm:$0xff] }
 0x16b   :  { %907 = vmatpush2.msra.mxu0 %v828_v19  ;;  %1051 = vmatpush2.msra.mxu1 %v976_v20  ;;  %v1090_v19 = vld [vmem:[#allocation6 + $0xc70] sm:$0xff]  ;;  %v1238_v20 = vld [vmem:[#allocation6 + $0xe80] sm:$0xff] }
 0x16c   :  { %908 = vmatprep.subr.mxu0 %v827_v21  ;;  %1052 = vmatprep.subr.mxu1 %v975_v24  ;;  %v1089_v21 = vld [vmem:[#allocation6 + $0xc68] sm:$0xff]  ;;  %v1237_v24 = vld [vmem:[#allocation6 + $0xe78] sm:$0xff] }
 0x16d   :  { %909 = vmatpush2.msra.mxu0 %v826_v25  ;;  %1053 = vmatpush2.msra.mxu1 %v974_v26  ;;  %v1088_v25 = vld [vmem:[#allocation6 + $0xc60] sm:$0xff]  ;;  %v1236_v26 = vld [vmem:[#allocation6 + $0xe70] sm:$0xff] }
 0x16e   :  { %910 = vmatprep.subr.mxu0 %v825_v27  ;;  %1054 = vmatprep.subr.mxu1 %v973_v28  ;;  %v1087_v27 = vld [vmem:[#allocation6 + $0xc58] sm:$0xff]  ;;  %v1235_v28 = vld [vmem:[#allocation6 + $0xe68] sm:$0xff] }
 0x16f   :  { %911 = vmatpush2.msra.mxu0 %v824_v22  ;;  %1055 = vmatpush2.msra.mxu1 %v972_v29  ;;  %v1086_v22 = vld [vmem:[#allocation6 + $0xc50] sm:$0xff]  ;;  %v1234_v29 = vld [vmem:[#allocation6 + $0xe60] sm:$0xff] }
 0x170   :  { %912 = vmatprep.subr.mxu0 %v823_v30  ;;  %1056 = vmatprep.subr.mxu1 %v971_v31  ;;  %v1085_v30 = vld [vmem:[#allocation6 + $0xc48] sm:$0xff]  ;;  %v1233_v31 = vld [vmem:[#allocation6 + $0xe58] sm:$0xff] }
 0x171   :  { %913 = vmatpush2.msra.mxu0 %v822_v32  ;;  %1057 = vmatpush2.msra.mxu1 %v970_v33  ;;  %v1084_v32 = vld [vmem:[#allocation6 + $0xc40] sm:$0xff]  ;;  %v1232_v33 = vld [vmem:[#allocation6 + $0xe50] sm:$0xff] }
 0x172   :  { %914 = vmatprep.subr.mxu0 %v821_v34  ;;  %1058 = vmatprep.subr.mxu1 %v969_v35  ;;  %v1083_v34 = vld [vmem:[#allocation6 + $0xc38] sm:$0xff]  ;;  %v1231_v35 = vld [vmem:[#allocation6 + $0xe48] sm:$0xff] }
 0x173   :  { %915 = vmatpush2.msra.mxu0 %v820_v36  ;;  %1059 = vmatpush2.msra.mxu1 %v968_v37  ;;  %v1082_v36 = vld [vmem:[#allocation6 + $0xc30] sm:$0xff]  ;;  %v1230_v37 = vld [vmem:[#allocation6 + $0xe40] sm:$0xff] }
 0x174   :  { %916 = vmatprep.subr.mxu0 %v819_v38  ;;  %1060 = vmatprep.subr.mxu1 %v967_v39  ;;  %v1081_v38 = vld [vmem:[#allocation6 + $0xc28] sm:$0xff]  ;;  %v1229_v39 = vld [vmem:[#allocation6 + $0xe38] sm:$0xff] }
 0x175   :  { %917 = vmatpush2.msra.mxu0 %v818_v40  ;;  %1061 = vmatpush2.msra.mxu1 %v966_v41  ;;  %v1080_v40 = vld [vmem:[#allocation6 + $0xc20] sm:$0xff]  ;;  %v1228_v41 = vld [vmem:[#allocation6 + $0xe30] sm:$0xff] }
 0x176   :  { %918 = vmatprep.subr.mxu0 %v817_v54  ;;  %1062 = vmatprep.subr.mxu1 %v965_v42  ;;  %v1079_v54 = vld [vmem:[#allocation6 + $0xc18] sm:$0xff]  ;;  %v1227_v42 = vld [vmem:[#allocation6 + $0xe28] sm:$0xff] }
 0x177   :  { %919 = vmatpush2.msra.mxu0 %v816_v43  ;;  %1063 = vmatpush2.msra.mxu1 %v964_v44  ;;  %v1078_v43 = vld [vmem:[#allocation6 + $0xc10] sm:$0xff]  ;;  %v1226_v44 = vld [vmem:[#allocation6 + $0xe20] sm:$0xff] }
 0x178   :  { %921 = vmatmul.mubr.f32.vlgmr.msra.gmra.mxu0 %v2151_v1  ;;  %1064 = vmatprep.subr.mxu1 %v963_v0  ;;  %v1101_v1 = vld [vmem:[#allocation6 + $0xcc8] sm:$0xff] }
 0x179   :  { %1148 = vmatprep.subr.mxu0 %v1107_v56  ;;  %1065 = vmatpush2.msra.mxu1 %v962_v45  ;;  %v1077_v0 = vld [vmem:[#allocation6 + $0xc08] sm:$0xff]  ;;  %v1225_v56 = vld [vmem:[#allocation6 + $0xe18] sm:$0xff]  ;;  %v1076_v45 = vld [vmem:[#allocation6 + $0xc00] sm:$0xff] }
 0x17a   :  { %1149 = vmatpush1.msra.mxu0 %v1106_v46  ;;  %1212 = vmatprep.mubr.f32.mxu0 %v2163_v11  ;;  %v1099_v11 = vld [vmem:[#allocation6 + $0xcb8] sm:$0xff]  ;;  %v1224_v46 = vld [vmem:[#allocation6 + $0xe10] sm:$0xff] }
 0x17b   :  { %1067 = vmatmul.mubr.f32.vlgmr.msra.gmra.mxu1 %v2160_v7  ;;  %1150 = vmatprep.subr.mxu0 %v1105_v47  ;;  %v1247_v7 = vld [vmem:[#allocation6 + $0xec8] sm:$0xff]  ;;  %v1139_v47 = vld [vmem:[#allocation6 + $0xdf8] sm:$0xff] }
 0x17c   :  { %1294 = vmatprep.subr.mxu1 %v1253_v48  ;;  %1151 = vmatpush1.msra.mxu0 %v1104_v6  ;;  %v1223_v48 = vld [vmem:[#allocation6 + $0xe08] sm:$0xff]  ;;  %v1138_v6 = vld [vmem:[#allocation6 + $0xdf0] sm:$0xff] }
 0x17d   :  { %1295 = vmatpush1.msra.mxu1 %v1252_v49  ;;  %1358 = vmatprep.mubr.f32.mxu1 %v2173_v17  ;;  %v1096_v17 = vld [vmem:[#allocation6 + $0xca0] sm:$0xff] }
 0x17e   :  { %1152 = vmatprep.subr.mxu0 %v1103_v50  ;;  %1296 = vmatprep.subr.mxu1 %v1251_v51  ;;  %v1222_v49 = vld [vmem:[#allocation6 + $0xe00] sm:$0xff]  ;;  %v1137_v50 = vld [vmem:[#allocation6 + $0xde8] sm:$0xff]  ;;  %v1285_v51 = vld [vmem:[#allocation6 + $0xff8] sm:$0xff] }
 0x17f   :  { %1153 = vmatpush1.msra.mxu0 %v1102_v52  ;;  %1297 = vmatpush1.msra.mxu1 %v1250_v53  ;;  %v1136_v52 = vld [vmem:[#allocation6 + $0xde0] sm:$0xff]  ;;  %v1284_v53 = vld [vmem:[#allocation6 + $0xff0] sm:$0xff] }
 0x180   :  { %1154 = vmatprep.subr.mxu0 %v1101_v1  ;;  %1298 = vmatprep.subr.mxu1 %v1249_v55  ;;  %v1135_v1 = vld [vmem:[#allocation6 + $0xdd8] sm:$0xff]  ;;  %v1283_v55 = vld [vmem:[#allocation6 + $0xfe8] sm:$0xff] }
 0x181   :  { %1155 = vmatpush1.msra.mxu0 %v1100_v57  ;;  %1299 = vmatpush1.msra.mxu1 %v1248_v58  ;;  %v1134_v57 = vld [vmem:[#allocation6 + $0xdd0] sm:$0xff]  ;;  %v1282_v58 = vld [vmem:[#allocation6 + $0xfe0] sm:$0xff] }
 0x182   :  { %1156 = vmatprep.subr.mxu0 %v1099_v11  ;;  %1300 = vmatprep.subr.mxu1 %v1247_v7  ;;  %v1133_v11 = vld [vmem:[#allocation6 + $0xdc8] sm:$0xff]  ;;  %v1281_v7 = vld [vmem:[#allocation6 + $0xfd8] sm:$0xff] }
 0x183   :  { %1157 = vmatpush1.msra.mxu0 %v1098_v59  ;;  %1301 = vmatpush1.msra.mxu1 %v1246_v60  ;;  %v1132_v59 = vld [vmem:[#allocation6 + $0xdc0] sm:$0xff]  ;;  %v1280_v60 = vld [vmem:[#allocation6 + $0xfd0] sm:$0xff] }
 0x184   :  { %1158 = vmatprep.subr.mxu0 %v1097_v61  ;;  %1302 = vmatprep.subr.mxu1 %v1245_v62  ;;  %v1131_v61 = vld [vmem:[#allocation6 + $0xdb8] sm:$0xff]  ;;  %v1279_v62 = vld [vmem:[#allocation6 + $0xfc8] sm:$0xff] }
 0x185   :  { %1159 = vmatpush1.msra.mxu0 %v1096_v17  ;;  %1303 = vmatpush1.msra.mxu1 %v1244_v63  ;;  %v1130_v17 = vld [vmem:[#allocation6 + $0xdb0] sm:$0xff]  ;;  %v1278_v63 = vld [vmem:[#allocation6 + $0xfc0] sm:$0xff] }
 0x186   :  { %1160 = vmatprep.subr.mxu0 %v1095_v2  ;;  %1304 = vmatprep.subr.mxu1 %v1243_v3  ;;  %v1129_v2 = vld [vmem:[#allocation6 + $0xda8] sm:$0xff]  ;;  %v1277_v3 = vld [vmem:[#allocation6 + $0xfb8] sm:$0xff] }
 0x187   :  { %1161 = vmatpush1.msra.mxu0 %v1094_v4  ;;  %1305 = vmatpush1.msra.mxu1 %v1242_v5  ;;  %v1128_v4 = vld [vmem:[#allocation6 + $0xda0] sm:$0xff]  ;;  %v1276_v5 = vld [vmem:[#allocation6 + $0xfb0] sm:$0xff] }
 0x188   :  { %1162 = vmatprep.subr.mxu0 %v1093_v8  ;;  %1306 = vmatprep.subr.mxu1 %v1241_v9  ;;  %v1127_v8 = vld [vmem:[#allocation6 + $0xd98] sm:$0xff]  ;;  %v1275_v9 = vld [vmem:[#allocation6 + $0xfa8] sm:$0xff] }
 0x189   :  { %1163 = vmatpush1.msra.mxu0 %v1092_v10  ;;  %1307 = vmatpush1.msra.mxu1 %v1240_v14  ;;  %v1126_v10 = vld [vmem:[#allocation6 + $0xd90] sm:$0xff]  ;;  %v1274_v14 = vld [vmem:[#allocation6 + $0xfa0] sm:$0xff] }
 0x18a   :  { %1164 = vmatprep.subr.mxu0 %v1091_v15  ;;  %1308 = vmatprep.subr.mxu1 %v1239_v16  ;;  %v1125_v15 = vld [vmem:[#allocation6 + $0xd88] sm:$0xff]  ;;  %v1273_v16 = vld [vmem:[#allocation6 + $0xf98] sm:$0xff] }
 0x18b   :  { %1165 = vmatpush1.msra.mxu0 %v1090_v19  ;;  %1309 = vmatpush1.msra.mxu1 %v1238_v20  ;;  %v1124_v19 = vld [vmem:[#allocation6 + $0xd80] sm:$0xff]  ;;  %v1272_v20 = vld [vmem:[#allocation6 + $0xf90] sm:$0xff] }
 0x18c   :  { %1166 = vmatprep.subr.mxu0 %v1089_v21  ;;  %1310 = vmatprep.subr.mxu1 %v1237_v24  ;;  %v1123_v21 = vld [vmem:[#allocation6 + $0xd78] sm:$0xff]  ;;  %v1271_v24 = vld [vmem:[#allocation6 + $0xf88] sm:$0xff] }
 0x18d   :  { %1167 = vmatpush1.msra.mxu0 %v1088_v25  ;;  %1311 = vmatpush1.msra.mxu1 %v1236_v26  ;;  %v1122_v25 = vld [vmem:[#allocation6 + $0xd70] sm:$0xff]  ;;  %v1270_v26 = vld [vmem:[#allocation6 + $0xf80] sm:$0xff] }
 0x18e   :  { %1168 = vmatprep.subr.mxu0 %v1087_v27  ;;  %1312 = vmatprep.subr.mxu1 %v1235_v28  ;;  %v1121_v27 = vld [vmem:[#allocation6 + $0xd68] sm:$0xff]  ;;  %v1269_v28 = vld [vmem:[#allocation6 + $0xf78] sm:$0xff] }
 0x18f   :  { %1169 = vmatpush1.msra.mxu0 %v1086_v22  ;;  %1313 = vmatpush1.msra.mxu1 %v1234_v29  ;;  %v1120_v22 = vld [vmem:[#allocation6 + $0xd60] sm:$0xff]  ;;  %v1268_v29 = vld [vmem:[#allocation6 + $0xf70] sm:$0xff] }
 0x190   :  { %1170 = vmatprep.subr.mxu0 %v1085_v30  ;;  %1314 = vmatprep.subr.mxu1 %v1233_v31  ;;  %v1119_v30 = vld [vmem:[#allocation6 + $0xd58] sm:$0xff]  ;;  %v1267_v31 = vld [vmem:[#allocation6 + $0xf68] sm:$0xff] }
 0x191   :  { %1171 = vmatpush1.msra.mxu0 %v1084_v32  ;;  %1315 = vmatpush1.msra.mxu1 %v1232_v33  ;;  %v1118_v32 = vld [vmem:[#allocation6 + $0xd50] sm:$0xff]  ;;  %v1266_v33 = vld [vmem:[#allocation6 + $0xf60] sm:$0xff] }
 0x192   :  { %1172 = vmatprep.subr.mxu0 %v1083_v34  ;;  %1316 = vmatprep.subr.mxu1 %v1231_v35  ;;  %v1117_v34 = vld [vmem:[#allocation6 + $0xd48] sm:$0xff]  ;;  %v1265_v35 = vld [vmem:[#allocation6 + $0xf58] sm:$0xff] }
 0x193   :  { %1173 = vmatpush1.msra.mxu0 %v1082_v36  ;;  %1317 = vmatpush1.msra.mxu1 %v1230_v37  ;;  %v1116_v36 = vld [vmem:[#allocation6 + $0xd40] sm:$0xff]  ;;  %v1264_v37 = vld [vmem:[#allocation6 + $0xf50] sm:$0xff] }
 0x194   :  { %1174 = vmatprep.subr.mxu0 %v1081_v38  ;;  %1318 = vmatprep.subr.mxu1 %v1229_v39  ;;  %v1115_v38 = vld [vmem:[#allocation6 + $0xd38] sm:$0xff]  ;;  %v1263_v39 = vld [vmem:[#allocation6 + $0xf48] sm:$0xff] }
 0x195   :  { %1175 = vmatpush1.msra.mxu0 %v1080_v40  ;;  %1319 = vmatpush1.msra.mxu1 %v1228_v41  ;;  %v1114_v40 = vld [vmem:[#allocation6 + $0xd30] sm:$0xff]  ;;  %v1262_v41 = vld [vmem:[#allocation6 + $0xf40] sm:$0xff] }
 0x196   :  { %1176 = vmatprep.subr.mxu0 %v1079_v54  ;;  %1320 = vmatprep.subr.mxu1 %v1227_v42  ;;  %v1113_v54 = vld [vmem:[#allocation6 + $0xd28] sm:$0xff]  ;;  %v1261_v42 = vld [vmem:[#allocation6 + $0xf38] sm:$0xff] }
 0x197   :  { %1177 = vmatpush1.msra.mxu0 %v1078_v43  ;;  %1321 = vmatpush1.msra.mxu1 %v1226_v44  ;;  %v1112_v43 = vld [vmem:[#allocation6 + $0xd20] sm:$0xff]  ;;  %v1260_v44 = vld [vmem:[#allocation6 + $0xf30] sm:$0xff] }
 0x198   :  { %1178 = vmatprep.subr.mxu0 %v1077_v0  ;;  %1322 = vmatprep.subr.mxu1 %v1225_v56  ;;  %v1111_v0 = vld [vmem:[#allocation6 + $0xd18] sm:$0xff]  ;;  %v1259_v56 = vld [vmem:[#allocation6 + $0xf28] sm:$0xff] }
 0x199   :  { %1179 = vmatpush1.msra.mxu0 %v1076_v45  ;;  %1323 = vmatpush1.msra.mxu1 %v1224_v46  ;;  %v200_v45 = vpop.f32.mrf.mxu1  ;;  %v1110_v46 = vld [vmem:[#allocation6 + $0xd10] sm:$0xff] }
 0x19a   :  { %1180 = vmatprep.subr.mxu0 %v1139_v47  ;;  %1324 = vmatprep.subr.mxu1 %v1223_v48  ;;  %v1258_v47 = vld [vmem:[#allocation6 + $0xf20] sm:$0xff]  ;;  %v1109_v48 = vld [vmem:[#allocation6 + $0xd08] sm:$0xff] }
 0x19b   :  { %1181 = vmatpush2.msra.mxu0 %v1138_v6  ;;  %1325 = vmatpush1.msra.mxu1 %v1222_v49  ;;  %v1257_v6 = vld [vmem:[#allocation6 + $0xf18] sm:$0xff]  ;;  %v1108_v49 = vld [vmem:[#allocation6 + $0xd00] sm:$0xff] }
 0x19c   :  { %1182 = vmatprep.subr.mxu0 %v1137_v50  ;;  %1326 = vmatprep.subr.mxu1 %v1285_v51  ;;  %v1256_v50 = vld [vmem:[#allocation6 + $0xf10] sm:$0xff]  ;;  %v1438_v51 = vrot.slane %v200_v45, 7  ;;  %v1411_v45 = vld [vmem:[#allocation6 + $0x1158] sm:$0xff] }
 0x19d   :  { %1183 = vmatpush2.msra.mxu0 %v1136_v52  ;;  %1327 = vmatpush2.msra.mxu1 %v1284_v53  ;;  %v1255_v52 = vld [vmem:[#allocation6 + $0xf08] sm:$0xff]  ;;  %v1399_v53 = vld [vmem:[#allocation6 + $0x10f8] sm:$0xff] }
 0x19e   :  { %1184 = vmatprep.subr.mxu0 %v1135_v1  ;;  %1328 = vmatprep.subr.mxu1 %v1283_v55  ;;  %v1254_v1 = vld [vmem:[#allocation6 + $0xf00] sm:$0xff]  ;;  %v1398_v55 = vld [vmem:[#allocation6 + $0x10f0] sm:$0xff] }
 0x19f   :  { %1185 = vmatpush2.msra.mxu0 %v1134_v57  ;;  %1329 = vmatpush2.msra.mxu1 %v1282_v58  ;;  %v1397_v57 = vld [vmem:[#allocation6 + $0x10e8] sm:$0xff]  ;;  %v1439_v58 = vsel %vm337_vm1, %v1438_v51, %v2121_v23  ;;  %v1388_v23 = vld [vmem:[#allocation6 + $0x10a0] sm:$0xff] }
 0x1a0   :  { %1186 = vmatprep.subr.mxu0 %v1133_v11  ;;  %1330 = vmatprep.subr.mxu1 %v1281_v7  ;;  %v1396_v11 = vld [vmem:[#allocation6 + $0x10e0] sm:$0xff]  ;;  %v1395_v7 = vld [vmem:[#allocation6 + $0x10d8] sm:$0xff] }
 0x1a1   :  { %1187 = vmatpush2.msra.mxu0 %v1132_v59  ;;  %1331 = vmatpush2.msra.mxu1 %v1280_v60  ;;  %v1394_v59 = vld [vmem:[#allocation6 + $0x10d0] sm:$0xff]  ;;  %v1393_v60 = vld [vmem:[#allocation6 + $0x10c8] sm:$0xff]  ;;  %v1404_v51 = vld [vmem:[#allocation6 + $0x1120] sm:$0xff] }
 0x1a2   :  { %1188 = vmatprep.subr.mxu0 %v1131_v61  ;;  %1332 = vmatprep.subr.mxu1 %v1279_v62  ;;  %v1392_v61 = vld [vmem:[#allocation6 + $0x10c0] sm:$0xff]  ;;  %v1390_v62 = vld [vmem:[#allocation6 + $0x10b0] sm:$0xff] }
 0x1a3   :  { %1189 = vmatpush2.msra.mxu0 %v1130_v17  ;;  %1333 = vmatpush2.msra.mxu1 %v1278_v63  ;;  %v1389_v17 = vld [vmem:[#allocation6 + $0x10a8] sm:$0xff]  ;;  %v1387_v63 = vld [vmem:[#allocation6 + $0x1098] sm:$0xff] }
 0x1a4   :  { %1190 = vmatprep.subr.mxu0 %v1129_v2  ;;  %1334 = vmatprep.subr.mxu1 %v1277_v3  ;;  %v1386_v2 = vld [vmem:[#allocation6 + $0x1090] sm:$0xff]  ;;  %v1384_v3 = vld [vmem:[#allocation6 + $0x1080] sm:$0xff] }
 0x1a5   :  { %1191 = vmatpush2.msra.mxu0 %v1128_v4  ;;  %1335 = vmatpush2.msra.mxu1 %v1276_v5  ;;  %v1383_v4 = vld [vmem:[#allocation6 + $0x1078] sm:$0xff]  ;;  %v1382_v5 = vld [vmem:[#allocation6 + $0x1070] sm:$0xff] }
 0x1a6   :  { %1192 = vmatprep.subr.mxu0 %v1127_v8  ;;  %1336 = vmatprep.subr.mxu1 %v1275_v9  ;;  %v1381_v8 = vld [vmem:[#allocation6 + $0x1068] sm:$0xff]  ;;  %v1380_v9 = vld [vmem:[#allocation6 + $0x1060] sm:$0xff] }
 0x1a7   :  { %1193 = vmatpush2.msra.mxu0 %v1126_v10  ;;  %1337 = vmatpush2.msra.mxu1 %v1274_v14  ;;  %v1379_v10 = vld [vmem:[#allocation6 + $0x1058] sm:$0xff]  ;;  %v1378_v14 = vld [vmem:[#allocation6 + $0x1050] sm:$0xff] }
 0x1a8   :  { %1194 = vmatprep.subr.mxu0 %v1125_v15  ;;  %1338 = vmatprep.subr.mxu1 %v1273_v16  ;;  %v1377_v15 = vld [vmem:[#allocation6 + $0x1048] sm:$0xff]  ;;  %v1376_v16 = vld [vmem:[#allocation6 + $0x1040] sm:$0xff] }
 0x1a9   :  { %1195 = vmatpush2.msra.mxu0 %v1124_v19  ;;  %1339 = vmatpush2.msra.mxu1 %v1272_v20  ;;  %v1375_v19 = vld [vmem:[#allocation6 + $0x1038] sm:$0xff]  ;;  %v1374_v20 = vld [vmem:[#allocation6 + $0x1030] sm:$0xff] }
 0x1aa   :  { %1196 = vmatprep.subr.mxu0 %v1123_v21  ;;  %1340 = vmatprep.subr.mxu1 %v1271_v24  ;;  %v1373_v21 = vld [vmem:[#allocation6 + $0x1028] sm:$0xff]  ;;  %v1372_v24 = vld [vmem:[#allocation6 + $0x1020] sm:$0xff] }
 0x1ab   :  { %1197 = vmatpush2.msra.mxu0 %v1122_v25  ;;  %1341 = vmatpush2.msra.mxu1 %v1270_v26  ;;  %v1371_v25 = vld [vmem:[#allocation6 + $0x1018] sm:$0xff]  ;;  %v1370_v26 = vld [vmem:[#allocation6 + $0x1010] sm:$0xff] }
 0x1ac   :  { %1198 = vmatprep.subr.mxu0 %v1121_v27  ;;  %1342 = vmatprep.subr.mxu1 %v1269_v28  ;;  %v1369_v27 = vld [vmem:[#allocation6 + $0x1008] sm:$0xff]  ;;  %v1368_v28 = vld [vmem:[#allocation6 + $0x1000] sm:$0xff] }
 0x1ad   :  { %1199 = vmatpush2.msra.mxu0 %v1120_v22  ;;  %1343 = vmatpush2.msra.mxu1 %v1268_v29  ;;  %v1431_v22 = vld [vmem:[#allocation6 + $0x11f8] sm:$0xff]  ;;  %v1430_v29 = vld [vmem:[#allocation6 + $0x11f0] sm:$0xff] }
 0x1ae   :  { %1200 = vmatprep.subr.mxu0 %v1119_v30  ;;  %1344 = vmatprep.subr.mxu1 %v1267_v31  ;;  %v1429_v30 = vld [vmem:[#allocation6 + $0x11e8] sm:$0xff]  ;;  %v1428_v31 = vld [vmem:[#allocation6 + $0x11e0] sm:$0xff] }
 0x1af   :  { %1201 = vmatpush2.msra.mxu0 %v1118_v32  ;;  %1345 = vmatpush2.msra.mxu1 %v1266_v33  ;;  %v1427_v32 = vld [vmem:[#allocation6 + $0x11d8] sm:$0xff]  ;;  %v1426_v33 = vld [vmem:[#allocation6 + $0x11d0] sm:$0xff] }
 0x1b0   :  { %1202 = vmatprep.subr.mxu0 %v1117_v34  ;;  %1346 = vmatprep.subr.mxu1 %v1265_v35  ;;  %v1425_v34 = vld [vmem:[#allocation6 + $0x11c8] sm:$0xff]  ;;  %v1424_v35 = vld [vmem:[#allocation6 + $0x11c0] sm:$0xff] }
 0x1b1   :  { %1203 = vmatpush2.msra.mxu0 %v1116_v36  ;;  %1347 = vmatpush2.msra.mxu1 %v1264_v37  ;;  %v1423_v36 = vld [vmem:[#allocation6 + $0x11b8] sm:$0xff]  ;;  %v1422_v37 = vld [vmem:[#allocation6 + $0x11b0] sm:$0xff] }
 0x1b2   :  { %1204 = vmatprep.subr.mxu0 %v1115_v38  ;;  %1348 = vmatprep.subr.mxu1 %v1263_v39  ;;  %v1421_v38 = vld [vmem:[#allocation6 + $0x11a8] sm:$0xff]  ;;  %v1420_v39 = vld [vmem:[#allocation6 + $0x11a0] sm:$0xff] }
 0x1b3   :  { %1205 = vmatpush2.msra.mxu0 %v1114_v40  ;;  %1349 = vmatpush2.msra.mxu1 %v1262_v41  ;;  %v1419_v40 = vld [vmem:[#allocation6 + $0x1198] sm:$0xff]  ;;  %v1418_v41 = vld [vmem:[#allocation6 + $0x1190] sm:$0xff] }
 0x1b4   :  { %1206 = vmatprep.subr.mxu0 %v1113_v54  ;;  %1350 = vmatprep.subr.mxu1 %v1261_v42  ;;  %v1417_v54 = vld [vmem:[#allocation6 + $0x1188] sm:$0xff]  ;;  %v1416_v42 = vld [vmem:[#allocation6 + $0x1180] sm:$0xff] }
 0x1b5   :  { %1207 = vmatpush2.msra.mxu0 %v1112_v43  ;;  %1351 = vmatpush2.msra.mxu1 %v1260_v44  ;;  %v1415_v43 = vld [vmem:[#allocation6 + $0x1178] sm:$0xff]  ;;  %v1414_v44 = vld [vmem:[#allocation6 + $0x1170] sm:$0xff] }
 0x1b6   :  { %1208 = vmatprep.subr.mxu0 %v1111_v0  ;;  %1352 = vmatprep.subr.mxu1 %v1259_v56  ;;  %v1413_v0 = vld [vmem:[#allocation6 + $0x1168] sm:$0xff]  ;;  %v1412_v56 = vld [vmem:[#allocation6 + $0x1160] sm:$0xff] }
 0x1b7   :  { %1209 = vmatpush2.msra.mxu0 %v1110_v46  ;;  %1353 = vmatpush2.msra.mxu1 %v1258_v47  ;;  %v1410_v46 = vld [vmem:[#allocation6 + $0x1150] sm:$0xff]  ;;  %v1409_v47 = vld [vmem:[#allocation6 + $0x1148] sm:$0xff] }
 0x1b8   :  { %1210 = vmatprep.subr.mxu0 %v1109_v48  ;;  %1354 = vmatprep.subr.mxu1 %v1257_v6  ;;  %v1408_v48 = vld [vmem:[#allocation6 + $0x1140] sm:$0xff]  ;;  %v1407_v6 = vld [vmem:[#allocation6 + $0x1138] sm:$0xff] }
 0x1b9   :  { %1211 = vmatpush2.msra.mxu0 %v1108_v49  ;;  %1355 = vmatpush2.msra.mxu1 %v1256_v50  ;;  %v1406_v49 = vld [vmem:[#allocation6 + $0x1130] sm:$0xff]  ;;  %v1405_v50 = vld [vmem:[#allocation6 + $0x1128] sm:$0xff] }
 0x1ba   :  { %1213 = vmatmul.mubr.f32.vlgmr.msra.gmra.mxu0 %v2166_v12  ;;  %1356 = vmatprep.subr.mxu1 %v1255_v52  ;;  %v1391_v12 = vld [vmem:[#allocation6 + $0x10b8] sm:$0xff] }
 0x1bb   :  { %1442 = vmatprep.subr.mxu0 %v1399_v53  ;;  %1357 = vmatpush2.msra.mxu1 %v1254_v1  ;;  %v1403_v52 = vld [vmem:[#allocation6 + $0x1118] sm:$0xff]  ;;  %v1402_v53 = vld [vmem:[#allocation6 + $0x1110] sm:$0xff]  ;;  %v1401_v1 = vld [vmem:[#allocation6 + $0x1108] sm:$0xff] }
 0x1bc   :  { %1443 = vmatpush1.msra.mxu0 %v1398_v55  ;;  %1506 = vmatprep.mubr.f32.mxu0 %v1439_v58  ;;  %v1400_v55 = vld [vmem:[#allocation6 + $0x1100] sm:$0xff] }
 0x1bd   :  { %1359 = vmatmul.mubr.f32.vlgmr.msra.gmra.mxu1 %v2169_v13  ;;  %1444 = vmatprep.subr.mxu0 %v1397_v57  ;;  %v1385_v13 = vld [vmem:[#allocation6 + $0x1088] sm:$0xff]  ;;  %v409_v57 = vpop.f32.mrf.mxu0 }
 0x1be   :  { %1445 = vmatpush1.msra.mxu0 %v1396_v11  ;;  %v486_v11 = vpop.f32.mrf.mxu1 }
 0x1bf   :  { %1446 = vmatprep.subr.mxu0 %v1395_v7  ;;  %v411_v58 = vpop.f32.mrf.mxu0 }
 0x1c0   :  { %1447 = vmatpush1.msra.mxu0 %v1394_v59  ;;  %v488_v59 = vpop.f32.mrf.mxu1 }
 0x1c1   :  { %1448 = vmatprep.subr.mxu0 %v1393_v60  ;;  %v487_v60 = vadd.f32 %v486_v11, %v409_v57 }
 0x1c2   :  { %1449 = vmatpush1.msra.mxu0 %v1392_v61 }
 0x1c3   :  { %1450 = vmatprep.subr.mxu0 %v1391_v12 }
 0x1c4   :  { %1451 = vmatpush1.msra.mxu0 %v1390_v62  ;;  %v489_v62 = vadd.f32 %v488_v59, %v411_v58  ;;  %v1965_v58 = vld [vmem:[%s2297_s0 + $0x8] sm:$0xff] }
 0x1c5   :  { %1452 = vmatprep.subr.mxu0 %v1389_v17  ;;  %v1546_v11 = vunpack.c.l.bf16 %v1965_v58 }
 0x1c6   :  { %1453 = vmatpush1.msra.mxu0 %v1388_v23 }
 0x1c7   :  { %1454 = vmatprep.subr.mxu0 %v1387_v63 }
 0x1c8   :  { %1455 = vmatpush1.msra.mxu0 %v1386_v2 }
 0x1c9   :  { %1456 = vmatprep.subr.mxu0 %v1385_v13 }
 0x1ca   :  { %1457 = vmatpush1.msra.mxu0 %v1384_v3 }
 0x1cb   :  { %1458 = vmatprep.subr.mxu0 %v1383_v4 }
 0x1cc   :  { %1459 = vmatpush1.msra.mxu0 %v1382_v5 }
 0x1cd   :  { %1460 = vmatprep.subr.mxu0 %v1381_v8 }
 0x1ce   :  { %1461 = vmatpush1.msra.mxu0 %v1380_v9 }
 0x1cf   :  { %1462 = vmatprep.subr.mxu0 %v1379_v10 }
 0x1d0   :  { %1463 = vmatpush1.msra.mxu0 %v1378_v14 }
 0x1d1   :  { %1464 = vmatprep.subr.mxu0 %v1377_v15 }
 0x1d2   :  { %1465 = vmatpush1.msra.mxu0 %v1376_v16 }
 0x1d3   :  { %1466 = vmatprep.subr.mxu0 %v1375_v19 }
 0x1d4   :  { %1467 = vmatpush1.msra.mxu0 %v1374_v20 }
 0x1d5   :  { %1468 = vmatprep.subr.mxu0 %v1373_v21 }
 0x1d6   :  { %1469 = vmatpush1.msra.mxu0 %v1372_v24 }
 0x1d7   :  { %1470 = vmatprep.subr.mxu0 %v1371_v25 }
 0x1d8   :  { %1471 = vmatpush1.msra.mxu0 %v1370_v26 }
 0x1d9   :  { %1472 = vmatprep.subr.mxu0 %v1369_v27  ;;  %v1515_v27 = vstv %s2301_s4 }
 0x1da   :  { %1473 = vmatpush1.msra.mxu0 %v1368_v28 }
 0x1db   :  { %1474 = vmatprep.subr.mxu0 %v1431_v22 }
 0x1dc   :  { %1475 = vmatpush2.msra.mxu0 %v1430_v29 }
 0x1dd   :  { %1476 = vmatprep.subr.mxu0 %v1429_v30 }
 0x1de   :  { %1477 = vmatpush2.msra.mxu0 %v1428_v31 }
 0x1df   :  { %1478 = vmatprep.subr.mxu0 %v1427_v32 }
 0x1e0   :  { %1479 = vmatpush2.msra.mxu0 %v1426_v33 }
 0x1e1   :  { %1480 = vmatprep.subr.mxu0 %v1425_v34 }
 0x1e2   :  { %1481 = vmatpush2.msra.mxu0 %v1424_v35 }
 0x1e3   :  { %1482 = vmatprep.subr.mxu0 %v1423_v36 }
 0x1e4   :  { %1483 = vmatpush2.msra.mxu0 %v1422_v37 }
 0x1e5   :  { %1484 = vmatprep.subr.mxu0 %v1421_v38 }
 0x1e6   :  { %1485 = vmatpush2.msra.mxu0 %v1420_v39  ;;  %v2044_v39 = vmov 1966171168  }
 0x1e7   :  { %1486 = vmatprep.subr.mxu0 %v1419_v40  ;;  %v1564_v40 = vunpack.c.l.s4 %v2044_v39 }
 0x1e8   :  { %1487 = vmatpush2.msra.mxu0 %v1418_v41  ;;  %v1566_v41 = vlaneseq }
 0x1e9   :  { %1488 = vmatprep.subr.mxu0 %v1417_v54  ;;  %v1565_v54 = vunpack.c.0.s8 %v1564_v40 }
 0x1ea   :  { %1489 = vmatpush2.msra.mxu0 %v1416_v42  ;;  %v2196_v42 = vshrl.u32 %v1566_v41, 7 }
 0x1eb   :  { %1490 = vmatprep.subr.mxu0 %v1415_v43 }
 0x1ec   :  { %1491 = vmatpush2.msra.mxu0 %v1414_v44 }
 0x1ed   :  { %1492 = vmatprep.subr.mxu0 %v1413_v0 }
 0x1ee   :  { %1493 = vmatpush2.msra.mxu0 %v1412_v56 }
 0x1ef   :  { %1494 = vmatprep.subr.mxu0 %v1411_v45 }
 0x1f0   :  { %1495 = vmatpush2.msra.mxu0 %v1410_v46  ;;  %v1568_v46 = vsub.s32 %v1565_v54, %v2196_v42 }
 0x1f1   :  { %1496 = vmatprep.subr.mxu0 %v1409_v47 }
 0x1f2   :  { %1497 = vmatpush2.msra.mxu0 %v1408_v48 }
 0x1f3   :  { %1498 = vmatprep.subr.mxu0 %v1407_v6  ;;  %v2203_v6 = vsub.s32 0, %v2196_v42 }
 0x1f4   :  { %1499 = vmatpush2.msra.mxu0 %v1406_v49  ;;  %v2206_v49 = vsub.s32 1, %v2196_v42 }
 0x1f5   :  { %1500 = vmatprep.subr.mxu0 %v1405_v50  ;;  %v1963_v50 = vld [vmem:[%s2297_s0] sm:$0xff] }
 0x1f6   :  { %1501 = vmatpush2.msra.mxu0 %v1404_v51  ;;  %v630_v7 = vpop.f32.mrf.mxu0  ;;  %v1544_v51 = vunpack.c.l.bf16 %v1963_v50 }
 0x1f7   :  { %1502 = vmatprep.subr.mxu0 %v1403_v52  ;;  %v635_v17 = vadd.f32 %v630_v7, %v487_v60  ;;  %v1545_v52 = vunpack.c.h.bf16 %v1963_v50  ;;  %v1547_v7 = vunpack.c.h.bf16 %v1965_v58 }
 0x1f8   :  { %1503 = vmatpush2.msra.mxu0 %v1402_v53  ;;  %v632_v61 = vpop.f32.mrf.mxu0 }
 0x1f9   :  { %1504 = vmatprep.subr.mxu0 %v1401_v1  ;;  %v776_v12 = vpop.f32.mrf.mxu1  ;;  %v636_v63 = vadd.f32 %v632_v61, %v489_v62  ;;  %v1966_v62 = vld [vmem:[%s2297_s0 + $0x28] sm:$0xff] }
 0x1fa   :  { %1505 = vmatpush2.msra.mxu0 %v1400_v55  ;;  %v781_v13 = vadd.f32 %v776_v12, %v635_v17  ;;  %v1964_v55 = vld [vmem:[%s2297_s0 + $0x20] sm:$0xff]  ;;  %v1554_v17 = vunpack.c.l.bf16 %v1966_v62 }
 0x1fb   :  { %1507 = vmatmul.mubr.f32.vlgmr.msra.gmra.mxu0 %v2177_v18  ;;  %v778_v2 = vpop.f32.mrf.mxu1  ;;  %v1552_v57 = vunpack.c.l.bf16 %v1964_v55  ;;  %v1553_v61 = vunpack.c.h.bf16 %v1964_v55 }
 0x1fc   :  { %v782_v5 = vadd.f32 %v778_v2, %v636_v63 }
 0x238   :  { %v922_v23 = vpop.f32.mrf.mxu0 }
 0x239   :  { %v927_v8 = vadd.f32 %v922_v23, %v781_v13  ;;  %v1555_v23 = vunpack.c.h.bf16 %v1966_v62 }
 0x23a   :  { %v924_v3 = vpop.f32.mrf.mxu0 }
 0x23b   :  { %v1068_v4 = vpop.f32.mrf.mxu1  ;;  %v928_v18 = vadd.f32 %v924_v3, %v782_v5  ;;  %v1967_v5 = vld [vmem:[%s2297_s0 + $0x10] sm:$0xff] }
 0x23c   :  { %v1073_v14 = vadd.f32 %v1068_v4, %v927_v8  ;;  %v1548_v8 = vunpack.c.l.bf16 %v1967_v5 }
 0x23d   :  { %v1070_v10 = vpop.f32.mrf.mxu1 }
 0x23e   :  { %v1074_v19 = vadd.f32 %v1070_v10, %v928_v18 }
 0x27a   :  { %v1214_v9 = vpop.f32.mrf.mxu0 }
 0x27b   :  { %v1219_v20 = vadd.f32 %v1214_v9, %v1073_v14  ;;  %v1549_v9 = vunpack.c.h.bf16 %v1967_v5 }
 0x27c   :  { %v1216_v15 = vpop.f32.mrf.mxu0 }
 0x27d   :  { %v1360_v16 = vpop.f32.mrf.mxu1  ;;  %v1220_v21 = vadd.f32 %v1216_v15, %v1074_v19 }
 0x27e   :  { %v1365_v25 = vadd.f32 %v1360_v16, %v1219_v20  ;;  %v1968_v16 = vld [vmem:[%s2297_s0 + $0x30] sm:$0xff] }
 0x27f   :  { %v1362_v24 = vpop.f32.mrf.mxu1  ;;  %v1556_v19 = vunpack.c.l.bf16 %v1968_v16 }
 0x280   :  { %v1366_v28 = vadd.f32 %v1362_v24, %v1220_v21 }
 0x2bb   :  { %v1508_v26 = vpop.f32.mrf.mxu0 }
 0x2bc   :  { %v1513_v22 = vadd.f32 %v1508_v26, %v1365_v25  ;;  %v1557_v25 = vunpack.c.h.bf16 %v1968_v16  ;;  %v1969_v26 = vld [vmem:[%s2297_s0 + $0x18] sm:$0xff] }
 0x2bd   :  { %v1510_v29 = vpop.f32.mrf.mxu0 }
 0x2be   :  { %v1516_v30 = vadd.f32 %v1515_v27, %v1513_v22  ;;  %v1514_v31 = vadd.f32 %v1510_v29, %v1366_v28 }
 0x2c0   :  { %v1911_v32 = vmul.f32 -1.442695, %v1516_v30  ;;  %v1517_v33 = vadd.f32 %v1515_v27, %v1514_v31  ;;  %v1550_v27 = vunpack.c.l.bf16 %v1969_v26  ;;  %v1551_v30 = vunpack.c.h.bf16 %v1969_v26  ;;  %v1970_v31 = vld [vmem:[%s2297_s0 + $0x38] sm:$0xff] }
 0x2c2   :  { %1953 = vpow2.f32 %v1911_v32  ;;  %v1912_v34 = vmul.f32 -1.442695, %v1517_v33  ;;  %v1558_v32 = vunpack.c.l.bf16 %v1970_v31 }
 0x2c4   :  { %1955 = vpow2.f32 %v1912_v34 }
 0x2cf   :  { %v1954_v35 = vpop.eup %1953 }
 0x2d0   :  { %v1524_v36 = vadd.f32 1.0, %v1954_v35 }
 0x2d1   :  { %v1956_v37 = vpop.eup %1955 }
 0x2d2   :  { %1957 = vrcp.f32 %v1524_v36  ;;  %v1525_v38 = vadd.f32 1.0, %v1956_v37  ;;  %v1559_v36 = vunpack.c.h.bf16 %v1970_v31 }
 0x2d4   :  { %1959 = vrcp.f32 %v1525_v38 }
 0x2df   :  { %v1958_v43 = vpop.eup %1957 }
 0x2e0   :  { %v1542_v56 = vadd.f32 1e-05, %v1958_v43 }
 0x2e1   :  { %v1960_v44 = vpop.eup %1959 }
 0x2e2   :  { %v1532_v0 = vcombine.low %v1958_v43, %v1960_v44  ;;  %v1543_v45 = vadd.f32 1e-05, %v1960_v44 }
 0x2e4   :  { %1913 = vst.sshfl [vmem:[%s2302_s5] sm:$0x33 pattern:$0x76325410] %v1532_v0  ;;  %v1562_v47 = vcombine.low %v1542_v56, %v1543_v45 }
 0x2e6   :  { %v1569_v48 = vrot.slane %v1562_v47, %v1568_v46 }
 0x2e8   :  { %v1577_v53 = vrot.slane %v1569_v48, %v1568_v46  ;;  %v1570_v1 = vcombine.high %v1569_v48, %v1569_v48 }
 0x2ea   :  { %v1588_v59 = vrot.slane %v1577_v53, %v2203_v6  ;;  %v1592_v60 = vrot.slane %v1577_v53, %v2206_v49  ;;  %v1584_v12 = vrot.slane %v1570_v1, %v1568_v46  ;;  %v1662_v46 = vand.u32 127, %v1566_v41 }
 0x2ec   :  { %v1605_v63 = vmul.f32 %v1588_v59, %v1544_v51  ;;  %v1606_v2 = vmul.f32 %v1592_v60, %v1545_v52  ;;  %v1596_v13 = vrot.slane %v1584_v12, %v2203_v6  ;;  %v1600_v3 = vrot.slane %v1584_v12, %v2206_v49 }
 0x2ed   :  { %v1607_v4 = vmul.f32 %v1588_v59, %v1546_v11  ;;  %v1608_v15 = vmul.f32 %v1592_v60, %v1547_v7  ;;  %v1609_v22 = vmul.f32 %v1588_v59, %v1548_v8  ;;  %v1610_v29 = vmul.f32 %v1592_v60, %v1549_v9 }
 0x2ee   :  { %v1621_v18 = vadd.f32 %v1606_v2, %v1605_v63  ;;  %v1613_v10 = vmul.f32 %v1596_v13, %v1552_v57  ;;  %v1614_v14 = vmul.f32 %v1600_v3, %v1553_v61  ;;  %v1615_v21 = vmul.f32 %v1596_v13, %v1554_v17 }
 0x2ef   :  { %v1616_v24 = vmul.f32 %v1600_v3, %v1555_v23  ;;  %v1624_v28 = vadd.f32 %v1608_v15, %v1607_v4  ;;  %v1617_v34 = vmul.f32 %v1596_v13, %v1556_v19  ;;  %v1618_v35 = vmul.f32 %v1600_v3, %v1557_v25 }
 0x2f0   :  { %1622 = vadd.xlane.f32.xlu0 %v1621_v18  ;;  %v1633_v20 = vadd.f32 %v1614_v14, %v1613_v10  ;;  %v1627_v37 = vadd.f32 %v1610_v29, %v1609_v22  ;;  %v1611_v38 = vmul.f32 %v1588_v59, %v1550_v27  ;;  %v1612_v39 = vmul.f32 %v1592_v60, %v1551_v30 }
 0x2f1   :  { %v1636_v33 = vadd.f32 %v1616_v24, %v1615_v21  ;;  %v1639_v40 = vadd.f32 %v1618_v35, %v1617_v34  ;;  %v1619_v54 = vmul.f32 %v1596_v13, %v1558_v32  ;;  %v1620_v43 = vmul.f32 %v1600_v3, %v1559_v36  ;;  %v66_v35 = vld [vmem:[%s2300_s3 + $0x18] sm:$0xff] }
 0x2f2   :  { %1634 = vadd.xlane.f32.xlu1 %v1633_v20  ;;  %v1630_v44 = vadd.f32 %v1612_v39, %v1611_v38  ;;  %v1667_v48 = vadd.s32 4294967288, %v1662_v46  ;;  %v1674_v51 = vadd.s32 4294967280, %v1662_v46  ;;  %v1681_v52 = vadd.s32 4294967272, %v1662_v46  ;;  %v63_v38 = vld [vmem:[%s2300_s3] sm:$0xff] }
 0x2f3   :  { %v1642_v0 = vadd.f32 %v1620_v43, %v1619_v54  ;;  %v2241_v58 = vsub.s32 %v1662_v46, %v2196_v42 }
 0x2f4   :  { %1625 = vadd.xlane.f32.xlu0 %v1624_v28  ;;  %v2238_v1 = vsub.s32 %v1667_v48, %v2196_v42  ;;  %v2244_v11 = vsub.s32 %v1674_v51, %v2196_v42  ;;  %v2247_v12 = vsub.s32 %v1681_v52, %v2196_v42 }
 0x2f6   :  { %1637 = vadd.xlane.f32.xlu1 %v1636_v33 }
 0x2f8   :  { %1628 = vadd.xlane.f32.xlu0 %v1627_v37  ;;  %v64_v37 = vld [vmem:[%s2300_s3 + $0x8] sm:$0xff] }
 0x2fa   :  { %1640 = vadd.xlane.f32.xlu1 %v1639_v40 }
 0x2fc   :  { %1631 = vadd.xlane.f32.xlu0 %v1630_v44 }
 0x2fe   :  { %1643 = vadd.xlane.f32.xlu1 %v1642_v0 }
 0x379   :  { %v1623_v56 = vpop.xlane.xlu0 %1622 }
 0x37a   :  { %v1645_v41 = vmul.f32 %v1623_v56, %v1623_v56 }
 0x37b   :  { %v1635_v45 = vpop.xlane.xlu1 %1634 }
 0x37c   :  { %v1649_v60 = vmul.f32 %v1635_v45, %v1635_v45  ;;  %v1666_v4 = vrot.slane %v1645_v41, %v2241_v58 }
 0x37d   :  { %v1626_v47 = vpop.xlane.xlu0 %1625 }
 0x37e   :  { %v1646_v55 = vmul.f32 %v1626_v47, %v1626_v47  ;;  %v1691_v5 = vrot.slane %v1649_v60, %v2241_v58 }
 0x37f   :  { %v1638_v50 = vpop.xlane.xlu1 %1637 }
 0x380   :  { %v1650_v57 = vmul.f32 %v1638_v50, %v1638_v50  ;;  %v1671_v17 = vrot.slane %v1646_v55, %v2238_v1 }
 0x381   :  { %v1629_v53 = vpop.xlane.xlu0 %1628 }
 0x382   :  { %v1647_v7 = vmul.f32 %v1629_v53, %v1629_v53  ;;  %v1695_v23 = vrot.slane %v1650_v57, %v2238_v1  ;;  %v1673_v18 = vsel %vm1672_vm2, %v1671_v17, %v1666_v4 }
 0x383   :  { %v1641_v59 = vpop.xlane.xlu1 %1640 }
 0x384   :  { %v1651_v61 = vmul.f32 %v1641_v59, %v1641_v59  ;;  %v1678_v2 = vrot.slane %v1647_v7, %v2244_v11  ;;  %v1696_v10 = vsel %vm1672_vm2, %v1695_v23, %v1691_v5 }
 0x385   :  { %v1632_v62 = vpop.xlane.xlu0 %1631 }
 0x386   :  { %v1648_v63 = vmul.f32 %v1632_v62, %v1632_v62  ;;  %v1700_v13 = vrot.slane %v1651_v61, %v2244_v11  ;;  %v1680_v14 = vsel %vm1679_vm3, %v1678_v2, %v1673_v18 }
 0x387   :  { %v1644_v3 = vpop.xlane.xlu1 %1643 }
 0x388   :  { %v1685_v42 = vrot.slane %v1648_v63, %v2247_v12  ;;  %v1652_v8 = vmul.f32 %v1644_v3, %v1644_v3  ;;  %v1701_v15 = vsel %vm1679_vm3, %v1700_v13, %v1696_v10 }
 0x38a   :  { %v1705_v9 = vrot.slane %v1652_v8, %v2247_v12  ;;  %v1687_v16 = vsel %vm1686_vm4, %v1685_v42, %v1680_v14 }
 0x38c   :  { %v1706_v19 = vsel %vm1686_vm4, %v1705_v9, %v1701_v15 }
 0x38d   :  { %v1707_v20 = vsel %vm337_vm1, %v1706_v19, %v1687_v16 }
 0x38e   :  { %v1710_v21 = vsel %vm1709_vm5, %v1707_v20, 0.0 }
 0x38f   :  { %1711 = vadd.xlane.f32.xlu0 %v1710_v21 }
 0x418   :  { %v1712_v24 = vpop.xlane.xlu0 %1711 }
 0x419   :  { %v1713_v25 = vmax.f32 %v1712_v24, 1e-24 }
 0x41b   :  { %1961 = vrsqrt.f32 %v1713_v25 }
 0x428   :  { %v1962_v26 = vpop.eup %1961 }
 0x429   :  { %v1719_v27 = vrot.slane %v1962_v26, %v2203_v6  ;;  %v1723_v29 = vrot.slane %v1962_v26, %v2206_v49  ;;  %v2045_v6 = vmov 0.0   ;;  %v65_v49 = vld [vmem:[%s2300_s3 + $0x10] sm:$0xff]  ;;  %s2047_s3 = smov [#allocation8]  }
 0x42a   :  { %1920 = vmatprep.subr.mxu1 %v2045_v6  ;;  %1928 = vmatprep.mubr.msk.f32.mxu1 %vm2046_vm6, %v2045_v6  ;;  %s1888_s24 = sshll.u32 %s2047_s3, 4  ;;  %s1889_s24 = int_to_ptr.vmem [resolvable:$true] %s1888_s24 }
 0x42b   :  { %v1727_v28 = vmul.f32 %v1719_v27, %v1626_v47  ;;  %v1726_v22 = vmul.f32 %v1719_v27, %v1623_v56  ;;  %v1730_v30 = vmul.f32 %v1723_v29, %v1635_v45  ;;  %v1731_v31 = vmul.f32 %v1723_v29, %v1638_v50  ;;  %1921 = vmatpush3.msra.mxu1 %v66_v35  ;;  %s2011_s25 = scalar_lea.vmem %s1889_s24, 32  ;;  %p2016_p11 = scmp.lt.s32.totalorder %s1889_s24, %s1889_s24 }
 0x42c   :  { %v1728_v32 = vmul.f32 %v1719_v27, %v1629_v53  ;;  %v1732_v33 = vmul.f32 %v1723_v29, %v1641_v59  ;;  %v1729_v34 = vmul.f32 %v1719_v27, %v1632_v62  ;;  %1922 = vmatprep.subr.mxu1 %v2045_v6  ;;  %v1733_v36 = vmul.f32 %v1723_v29, %v1644_v3  ;;  %p2012_p10 = scmp.ne.s32.totalorder %s1889_s24, %s2011_s25  ;;  %p2017_p12 = scmp.lt.s32.totalorder %s2011_s25, %s2011_s25 }
 0x42d   :  { %1746 = vperm.xlu0 %1943, %v1727_v28   ;;  %1743 = vperm.xlu1 %1942, %v1726_v22  }
 0x42e   :  { %1923 = vmatpush3.msra.mxu1 %v65_v49  ;;  %p2018_p13 = por %p2017_p12, %p2016_p11 }
 0x42f   :  { %1924 = vmatprep.subr.mxu1 %v2045_v6 }
 0x430   :  { %1925 = vmatpush3.msra.mxu1 %v64_v37  ;;  %p2019_p0 = pnand %p2018_p13, %p2012_p10 }
 0x431   :  { %1755 = vperm.xlu1 %1942, %v1730_v30   ;;  %1926 = vmatprep.subr.mxu1 %v2045_v6 }
 0x432   :  { %1927 = vmatpush3.msra.mxu1 %v63_v38 }
 0x435   :  { %1758 = vperm.xlu1 %1942, %v1731_v31  }
 0x439   :  { %1749 = vperm.xlu1 %1942, %v1728_v32  }
 0x43d   :  { %1761 = vperm.xlu1 %1942, %v1732_v33  }
 0x441   :  { %1752 = vperm.xlu1 %1942, %v1729_v34  }
 0x445   :  { %1764 = vperm.xlu1 %1942, %v1733_v36  }
 0x4a8   :  { %v1744_v39 = vpop.permute.xlu1 %1743  ;;  %v1747_v0 = vpop.permute.xlu0 %1746 }
 0x4a9   :  { %v1773_v45 = vrot.slane %v1747_v0, %v2238_v1  ;;  %v1769_v46 = vrot.slane %v1744_v39, %v2241_v58 }
 0x4ab   :  { %v1774_v55 = vsel %vm1672_vm2, %v1773_v45, %v1769_v46 }
 0x4ac   :  { %v1756_v40 = vpop.permute.xlu1 %1755 }
 0x4ad   :  { %v1788_v51 = vrot.slane %v1756_v40, %v2241_v58 }
 0x4b0   :  { %v1759_v54 = vpop.permute.xlu1 %1758 }
 0x4b1   :  { %v1792_v47 = vrot.slane %v1759_v54, %v2238_v1 }
 0x4b3   :  { %v1793_v57 = vsel %vm1672_vm2, %v1792_v47, %v1788_v51 }
 0x4b4   :  { %v1750_v43 = vpop.permute.xlu1 %1749 }
 0x4b5   :  { %v1778_v48 = vrot.slane %v1750_v43, %v2244_v11 }
 0x4b7   :  { %v1779_v59 = vsel %vm1679_vm3, %v1778_v48, %v1774_v55 }
 0x4b8   :  { %v1762_v44 = vpop.permute.xlu1 %1761 }
 0x4b9   :  { %v1797_v50 = vrot.slane %v1762_v44, %v2244_v11 }
 0x4bb   :  { %v1798_v41 = vsel %vm1679_vm3, %v1797_v50, %v1793_v57 }
 0x4bc   :  { %v1753_v56 = vpop.permute.xlu1 %1752 }
 0x4bd   :  { %v1783_v52 = vrot.slane %v1753_v56, %v2247_v12 }
 0x4bf   :  { %v1784_v1 = vsel %vm1686_vm4, %v1783_v52, %v1779_v59 }
 0x4c0   :  { %v1765_v53 = vpop.permute.xlu1 %1764 }
 0x4c1   :  { %v1802_v7 = vrot.slane %v1765_v53, %v2247_v12 }
 0x4c3   :  { %v1803_v60 = vsel %vm1686_vm4, %v1802_v7, %v1798_v41 }
 0x4c4   :  { %v1804_v11 = vsel %vm337_vm1, %v1803_v60, %v1784_v1 }
 0x4c5   :  { %1929 = vmatmul.mubr.msk.f32.vlgmr.msra.gmra.mxu1 %vm93_vm0, %v1804_v11 }
 0x585   :  { %v1873_v58 = vpop.f32.mrf.mxu1 }
 0x586   :  { %v1877_v61 = vmul.f32 16.0, %v1873_v58 }
 0x587   :  { %v1930_v62 = vpop.f32.mrf.mxu1 }
 0x588   :  { %1879 = vst.msk [vmem:[#allocation8] sm:$0x3] %vm1878_vm7, %v1877_v61 }
 0x589   :  { %2022 = shalt.err (!%p2019_p0)
}
 0x58a   :  { %1891 = dma.vmem_to_hbm [thread:$0]  %s1889_s24, 32, %s2303_s6, [#allocation5]  }
 0x58b   :  { %2035 = dma.done.wait [#allocation5], 32  }
 0x58c   :  { %2036 = vsyncadd [#allocation5], 4294967264 }
 0x58d   :  { %1897 = vsyncpa [#allocation4], 1 }
 0x58e   :  { %1898 = vsyncpa [#allocation7], 1 }
 0x58f   :  { %1899 = vsyncpa [#allocation5], 1 }

</bundles_post_ra>
